<compile_context>
chip_gen: v5e
topology: v5e:2x2
jax: 0.10.0
libtpu: 0.0.40
codegen_flags: <defaults>
</compile_context>

<pallas_src>
import jax
import jax.numpy as jnp
from jax.experimental import pallas as pl
from jax.experimental.pallas import tpu as pltpu


def _round_up(x, m):
    return (x + m - 1) // m * m


def _vmem_limit_bytes():
    """~75% of physical VMEM: ~96 MiB on v5e/v6e (128 MiB), ~48 MiB on v7x."""
    try:
        cap = pltpu.get_tpu_info().vmem_capacity_bytes
    except Exception:
        cap = 64 * 1024 * 1024
    return int(min(cap * 3 // 4, 100 * 1024 * 1024))


def _choose_batch_block(B, N, target_rows=256, max_rows=1024):
    """Batch elements per grid step: smallest divisor of B whose Bblk*N
    reaches `target_rows` projection rows (MXU row fill), else the largest
    block whose Bblk*N stays under `max_rows` (keeps the (Bblk, N, N) softmax
    intermediates VMEM-friendly)."""
    divs = [d for d in range(1, B + 1) if B % d == 0 and d * N <= max_rows]
    if not divs:
        return 1
    for d in divs:
        if d * N >= target_rows:
            return d
    return divs[-1]


def _mergeblock2_kernel(x1_ref, x2_ref, w1_ref, b1_ref, w2_ref, b2_ref,
                        gamma_ref, out_ref):
    """One batch block, both Self_Attn modules.

    x1_ref:   (Bblk, N, C1) f32      x2_ref:   (Bblk, N, C2) f32
    w*_ref:   (C, 2*Cqp + C) bf16    fused [Wq | Wk | Wv], q/k lane-padded
    b*_ref:   (1, 2*Cqp + C) f32
    gamma_ref:(2,) f32 in SMEM
    out_ref:  (Bblk, N, C1 + C2) f32
    """

    def self_attn(x, w_ref, b_ref, gamma):
        bblk, n, c = x.shape
        cqp = (w_ref.shape[1] - c) // 2
        # Fused Q/K/V projection: one wide MXU matmul over Bblk*N rows,
        # bf16 operands, f32 accumulation.
        x2d = x.reshape(bblk * n, c).astype(jnp.bfloat16)
        proj = jnp.dot(x2d, w_ref[...],
                       preferred_element_type=jnp.float32) + b_ref[...]
        q = proj[:, :cqp].reshape(bblk, n, cqp)
        k = proj[:, cqp:2 * cqp].reshape(bblk, n, cqp)
        v = proj[:, 2 * cqp:].reshape(bblk, n, c)

        # energy[b, i, j] = q_i . k_j  -- contraction over the channel (last)
        # dim of both operands, no transposed copy of k materialized.
        energy = jnp.einsum("bqc,bkc->bqk",
                            q.astype(jnp.bfloat16), k.astype(jnp.bfloat16),
                            preferred_element_type=jnp.float32)

        # Numerically stable softmax over the key axis (f32, EUP reciprocal).
        m = jnp.max(energy, axis=-1, keepdims=True)
        e = jnp.exp(energy - m)
        denom = jnp.sum(e, axis=-1, keepdims=True)
        attn = e * pl.reciprocal(denom, approx=True)

        out = jnp.einsum("bqk,bkc->bqc",
                         attn.astype(jnp.bfloat16), v.astype(jnp.bfloat16),
                         preferred_element_type=jnp.float32)
        # Residual adds the ORIGINAL f32 x (PyTorch semantics).
        return gamma * out + x

    x1 = x1_ref[...]
    x2 = x2_ref[...]
    y1 = self_attn(x1, w1_ref, b1_ref, gamma_ref[0])
    y2 = self_attn(x2, w2_ref, b2_ref, gamma_ref[1])

    # Channel concat happens directly in the fused output block.
    c1 = x1.shape[-1]
    out_ref[:, :, :c1] = y1.astype(out_ref.dtype)
    out_ref[:, :, c1:] = y2.astype(out_ref.dtype)


def init_self_attn_params(key, in_dim):
    """Deterministic params matching Self_Attn(in_dim) shapes.

    Conv2d(in, out, kernel_size=1) weight (out, in, 1, 1) is stored here
    transposed as (in, out) so the 1x1 conv is a matmul on the channel axis.
    """
    cq = in_dim // 8
    k1, k2, k3, k4, k5, k6 = jax.random.split(key, 6)
    scale = 0.05
    return {
        "wq": (scale * jax.random.normal(k1, (in_dim, cq))).astype(jnp.float32),
        "bq": (scale * jax.random.normal(k2, (1, cq))).astype(jnp.float32),
        "wk": (scale * jax.random.normal(k3, (in_dim, cq))).astype(jnp.float32),
        "bk": (scale * jax.random.normal(k4, (1, cq))).astype(jnp.float32),
        "wv": (scale * jax.random.normal(k5, (in_dim, in_dim))).astype(jnp.float32),
        "bv": (scale * jax.random.normal(k6, (1, in_dim))).astype(jnp.float32),
        # PyTorch initializes gamma to zeros(1); use a nonzero deterministic
        # value so the attention path actually contributes to the output.
        "gamma": jnp.float32(0.5),
    }


def prepare_mergeblock2_params(params1, params2):
    """One-time weight prep (outside the jit): fuse [Wq|Wk|Wv] per module into
    a single (C, 2*Cqp + C) bf16 matrix (+ fused f32 bias).  q/k column blocks
    are zero-padded to a lane multiple so in-kernel slices are lane-aligned;
    padded q/k channels are exactly zero and do not change the energy."""
    def one(p):
        cq = p["wq"].shape[1]
        cqp = _round_up(cq, 128)
        padc = lambda a: jnp.pad(a, ((0, 0), (0, cqp - a.shape[1])))
        w = jnp.concatenate([padc(p["wq"]), padc(p["wk"]), p["wv"]],
                            axis=1).astype(jnp.bfloat16)
        b = jnp.concatenate([padc(p["bq"]), padc(p["bk"]), p["bv"]],
                            axis=1).astype(jnp.float32)
        return w, b

    w1, b1 = one(params1)
    w2, b2 = one(params2)
    gammas = jnp.stack([params1["gamma"], params2["gamma"]]).astype(jnp.float32)
    return w1, b1, w2, b2, gammas


@jax.jit
def mergeblock2_forward(in1, in2, w1, b1, w2, b2, gammas):
    """mergeblock2: concat(Self_Attn(in1), Self_Attn(in2)) along channels."""
    B, C1, H, W = in1.shape
    _, C2, _, _ = in2.shape
    N = H * W

    # NCHW -> (B, N, C) token-major slabs (one transpose each, up front);
    # x stays f32 and unpadded -- the bf16 cast happens inside the kernel.
    x1 = in1.reshape(B, C1, N).transpose(0, 2, 1).astype(jnp.float32)
    x2 = in2.reshape(B, C2, N).transpose(0, 2, 1).astype(jnp.float32)

    bblk = _choose_batch_block(B, N)

    # Grid-invariant operands: whole array resident in VMEM (single buffer,
    # one DMA, no double-buffering across the batch grid axis).
    vmem_full = pl.BlockSpec(memory_space=pltpu.MemorySpace.VMEM)

    out = pl.pallas_call(
        _mergeblock2_kernel,
        out_shape=jax.ShapeDtypeStruct((B, N, C1 + C2), jnp.float32),
        grid_spec=pltpu.PrefetchScalarGridSpec(
            num_scalar_prefetch=0,
            grid=(B // bblk,),
            in_specs=[
                pl.BlockSpec((bblk, N, C1), lambda b: (b, 0, 0)),     # x1
                pl.BlockSpec((bblk, N, C2), lambda b: (b, 0, 0)),     # x2
                vmem_full,                                            # W1 fused
                vmem_full,                                            # b1 fused
                vmem_full,                                            # W2 fused
                vmem_full,                                            # b2 fused
                pl.BlockSpec(memory_space=pltpu.MemorySpace.SMEM),    # gammas
            ],
            out_specs=pl.BlockSpec((bblk, N, C1 + C2), lambda b: (b, 0, 0)),
        ),
        compiler_params=pltpu.CompilerParams(
            dimension_semantics=("parallel",),     # batch blocks independent
            vmem_limit_bytes=_vmem_limit_bytes()),
    )(x1, x2, w1, b1, w2, b2, gammas)

    # Single transpose back to NCHW (kept in the wrapper: N < 128 here, an
    # in-kernel transposed store would hit masked vst).
    return out.transpose(0, 2, 1).reshape(B, C1 + C2, H, W)


def self_attn_ref(x_nchw, params):
    """Pure-JAX f32 reference for correctness checking."""
    B, C, H, W = x_nchw.shape
    N = H * W
    x_t = x_nchw.reshape(B, C, N).transpose(0, 2, 1).astype(jnp.float32)
    q = x_t @ params["wq"] + params["bq"]
    k = x_t @ params["wk"] + params["bk"]
    v = x_t @ params["wv"] + params["bv"]
    energy = jnp.einsum("bic,bjc->bij", q, k)
    attn = jax.nn.softmax(energy, axis=-1)
    out = jnp.einsum("bij,bjc->bic", attn, v)
    out = params["gamma"] * out + x_t
    return out.transpose(0, 2, 1).reshape(B, C, H, W)


if __name__ == "__main__":
    # Small shapes consistent with the forward (channels divisible by 8).
    # The real module uses in_dims 2048 / 2208; scaled down for the demo.
    B, H, W = 2, 8, 8
    C1, C2 = 32, 40

    key = jax.random.PRNGKey(0)
    k_in1, k_in2, k_p1, k_p2 = jax.random.split(key, 4)

    in1 = jax.random.normal(k_in1, (B, C1, H, W), dtype=jnp.float32)
    in2 = jax.random.normal(k_in2, (B, C2, H, W), dtype=jnp.float32)

    params1 = init_self_attn_params(k_p1, C1)
    params2 = init_self_attn_params(k_p2, C2)

    # Weight fusion / padding done once, outside the jit'd forward.
    w1, b1, w2, b2, gammas = prepare_mergeblock2_params(params1, params2)

    out = mergeblock2_forward(in1, in2, w1, b1, w2, b2, gammas)
    out = jax.block_until_ready(out)

    # Verify against the pure-JAX f32 reference (bf16 matmuls + approx
    # reciprocal -> loosened tolerances).
    ref = jnp.concatenate(
        [self_attn_ref(in1, params1), self_attn_ref(in2, params2)], axis=1)
    assert out.shape == (B, C1 + C2, H, W), out.shape
    max_err = float(jnp.max(jnp.abs(out - ref)))
    assert jnp.allclose(out, ref, atol=5e-2, rtol=5e-2), max_err

    print("KERNEL_OK")
</pallas_src>

<mosaic_0001>
module attributes {stable_mosaic.version = 11 : i64} {
  func.func @_mergeblock2_kernel(%arg0: i32, %arg1: memref<2x64x32xf32, #tpu.memory_space<vmem>>, %arg2: memref<2x64x40xf32, #tpu.memory_space<vmem>>, %arg3: memref<32x288xbf16, #tpu.memory_space<vmem>>, %arg4: memref<1x288xf32, #tpu.memory_space<vmem>>, %arg5: memref<40x296xbf16, #tpu.memory_space<vmem>>, %arg6: memref<1x296xf32, #tpu.memory_space<vmem>>, %arg7: memref<2xf32, #tpu.memory_space<smem>>, %arg8: memref<2x64x72xf32, #tpu.memory_space<vmem>>) attributes {dimension_semantics = [#tpu.dimension_semantics<parallel>], iteration_bounds = array<i64: 1>, scalar_prefetch = 0 : i64, scratch_operands = 0 : i64, tpu.core_type = #tpu.core_type<tc>, window_params = [{transform_indices = @transform_0, window_bounds = array<i64: 2, 64, 32>}, {transform_indices = @transform_1, window_bounds = array<i64: 2, 64, 40>}, {pipeline_mode = #tpu.pipeline_mode<synchronous>, transform_indices = @transform_2, window_bounds = array<i64: 32, 288>}, {pipeline_mode = #tpu.pipeline_mode<synchronous>, transform_indices = @transform_3, window_bounds = array<i64: 1, 288>}, {pipeline_mode = #tpu.pipeline_mode<synchronous>, transform_indices = @transform_4, window_bounds = array<i64: 40, 296>}, {pipeline_mode = #tpu.pipeline_mode<synchronous>, transform_indices = @transform_5, window_bounds = array<i64: 1, 296>}, {transform_indices = @transform_6, window_bounds = array<i64: 2>}, {transform_indices = @transform_7, window_bounds = array<i64: 2, 64, 72>}]} {
    %c0 = arith.constant 0 : index
    %c0_0 = arith.constant 0 : index
    %c0_1 = arith.constant 0 : index
    %0 = vector.load %arg1[%c0, %c0_0, %c0_1] : memref<2x64x32xf32, #tpu.memory_space<vmem>>, vector<2x64x32xf32>
    %c0_2 = arith.constant 0 : index
    %c0_3 = arith.constant 0 : index
    %c0_4 = arith.constant 0 : index
    %1 = vector.load %arg2[%c0_2, %c0_3, %c0_4] : memref<2x64x40xf32, #tpu.memory_space<vmem>>, vector<2x64x40xf32>
    %c0_5 = arith.constant 0 : index
    %2 = memref.load %arg7[%c0_5] : memref<2xf32, #tpu.memory_space<smem>>
    %3 = vector.shape_cast %0 : vector<2x64x32xf32> to vector<128x32xf32>
    %4 = arith.truncf %3 : vector<128x32xf32> to vector<128x32xbf16>
    %c0_6 = arith.constant 0 : index
    %c0_7 = arith.constant 0 : index
    %5 = vector.load %arg3[%c0_6, %c0_7] : memref<32x288xbf16, #tpu.memory_space<vmem>>, vector<32x288xbf16>
    %cst = arith.constant dense<0.000000e+00> : vector<128x288xf32>
    %6 = tpu.matmul %4, %5, %cst {dimension_numbers = #tpu.dot_dimension_numbers<[1], [0], [0], [1], [0, 0, 1, 1], [], []>} : vector<128x32xbf16>, vector<32x288xbf16>, vector<128x288xf32> -> vector<128x288xf32>
    %c0_8 = arith.constant 0 : index
    %c0_9 = arith.constant 0 : index
    %7 = vector.load %arg4[%c0_8, %c0_9] : memref<1x288xf32, #tpu.memory_space<vmem>>, vector<1x288xf32>
    %8 = vector.broadcast %7 : vector<1x288xf32> to vector<128x288xf32>
    %9 = arith.addf %6, %8 : vector<128x288xf32>
    %10 = vector.extract_strided_slice %9 {offsets = [0, 0], sizes = [128, 128], strides = [1, 1]} : vector<128x288xf32> to vector<128x128xf32>
    %11 = vector.shape_cast %10 : vector<128x128xf32> to vector<2x64x128xf32>
    %12 = vector.extract_strided_slice %9 {offsets = [0, 128], sizes = [128, 128], strides = [1, 1]} : vector<128x288xf32> to vector<128x128xf32>
    %13 = vector.shape_cast %12 : vector<128x128xf32> to vector<2x64x128xf32>
    %14 = vector.extract_strided_slice %9 {offsets = [0, 256], sizes = [128, 32], strides = [1, 1]} : vector<128x288xf32> to vector<128x32xf32>
    %15 = vector.shape_cast %14 : vector<128x32xf32> to vector<2x64x32xf32>
    %16 = arith.truncf %11 : vector<2x64x128xf32> to vector<2x64x128xbf16>
    %17 = arith.truncf %13 : vector<2x64x128xf32> to vector<2x64x128xbf16>
    "tpu.trace_start"() <{level = 10 : i32, message = "bqc,bkc->bqk"}> : () -> ()
    %cst_10 = arith.constant dense<0.000000e+00> : vector<2x64x64xf32>
    %18 = tpu.matmul %16, %17, %cst_10 {dimension_numbers = #tpu.dot_dimension_numbers<[2], [2], [1], [1], [0, 0, 0, 1, 1, 1], [0], [0]>} : vector<2x64x128xbf16>, vector<2x64x128xbf16>, vector<2x64x64xf32> -> vector<2x64x64xf32>
    "tpu.trace_stop"() : () -> ()
    %cst_11 = arith.constant dense<0xFF800000> : vector<2x64xf32>
    %19 = vector.multi_reduction <maximumf>, %18, %cst_11 [2] : vector<2x64x64xf32> to vector<2x64xf32>
    %20 = vector.shape_cast %19 : vector<2x64xf32> to vector<2x64x1xf32>
    %21 = vector.broadcast %20 : vector<2x64x1xf32> to vector<2x64x64xf32>
    %22 = arith.subf %18, %21 : vector<2x64x64xf32>
    %23 = math.exp %22 : vector<2x64x64xf32>
    %cst_12 = arith.constant dense<0.000000e+00> : vector<2x64xf32>
    %24 = vector.multi_reduction <add>, %23, %cst_12 [2] : vector<2x64x64xf32> to vector<2x64xf32>
    %25 = vector.shape_cast %24 : vector<2x64xf32> to vector<2x64x1xf32>
    %26 = tpu.reciprocal %25 {approx = true} : vector<2x64x1xf32> -> vector<2x64x1xf32>
    %27 = vector.broadcast %26 : vector<2x64x1xf32> to vector<2x64x64xf32>
    %28 = arith.mulf %23, %27 : vector<2x64x64xf32>
    %29 = arith.truncf %28 : vector<2x64x64xf32> to vector<2x64x64xbf16>
    %30 = arith.truncf %15 : vector<2x64x32xf32> to vector<2x64x32xbf16>
    "tpu.trace_start"() <{level = 10 : i32, message = "bqk,bkc->bqc"}> : () -> ()
    %cst_13 = arith.constant dense<0.000000e+00> : vector<2x64x32xf32>
    %31 = tpu.matmul %29, %30, %cst_13 {dimension_numbers = #tpu.dot_dimension_numbers<[2], [1], [1], [2], [0, 0, 0, 1, 1, 2], [0], [0]>} : vector<2x64x64xbf16>, vector<2x64x32xbf16>, vector<2x64x32xf32> -> vector<2x64x32xf32>
    "tpu.trace_stop"() : () -> ()
    %32 = vector.broadcast %2 : f32 to vector<2x64x32xf32>
    %33 = arith.mulf %32, %31 : vector<2x64x32xf32>
    %34 = arith.addf %33, %0 : vector<2x64x32xf32>
    %c1 = arith.constant 1 : index
    %35 = memref.load %arg7[%c1] : memref<2xf32, #tpu.memory_space<smem>>
    %36 = vector.shape_cast %1 : vector<2x64x40xf32> to vector<128x40xf32>
    %37 = arith.truncf %36 : vector<128x40xf32> to vector<128x40xbf16>
    %c0_14 = arith.constant 0 : index
    %c0_15 = arith.constant 0 : index
    %38 = vector.load %arg5[%c0_14, %c0_15] : memref<40x296xbf16, #tpu.memory_space<vmem>>, vector<40x296xbf16>
    %cst_16 = arith.constant dense<0.000000e+00> : vector<128x296xf32>
    %39 = tpu.matmul %37, %38, %cst_16 {dimension_numbers = #tpu.dot_dimension_numbers<[1], [0], [0], [1], [0, 0, 1, 1], [], []>} : vector<128x40xbf16>, vector<40x296xbf16>, vector<128x296xf32> -> vector<128x296xf32>
    %c0_17 = arith.constant 0 : index
    %c0_18 = arith.constant 0 : index
    %40 = vector.load %arg6[%c0_17, %c0_18] : memref<1x296xf32, #tpu.memory_space<vmem>>, vector<1x296xf32>
    %41 = vector.broadcast %40 : vector<1x296xf32> to vector<128x296xf32>
    %42 = arith.addf %39, %41 : vector<128x296xf32>
    %43 = vector.extract_strided_slice %42 {offsets = [0, 0], sizes = [128, 128], strides = [1, 1]} : vector<128x296xf32> to vector<128x128xf32>
    %44 = vector.shape_cast %43 : vector<128x128xf32> to vector<2x64x128xf32>
    %45 = vector.extract_strided_slice %42 {offsets = [0, 128], sizes = [128, 128], strides = [1, 1]} : vector<128x296xf32> to vector<128x128xf32>
    %46 = vector.shape_cast %45 : vector<128x128xf32> to vector<2x64x128xf32>
    %47 = vector.extract_strided_slice %42 {offsets = [0, 256], sizes = [128, 40], strides = [1, 1]} : vector<128x296xf32> to vector<128x40xf32>
    %48 = vector.shape_cast %47 : vector<128x40xf32> to vector<2x64x40xf32>
    %49 = arith.truncf %44 : vector<2x64x128xf32> to vector<2x64x128xbf16>
    %50 = arith.truncf %46 : vector<2x64x128xf32> to vector<2x64x128xbf16>
    "tpu.trace_start"() <{level = 10 : i32, message = "bqc,bkc->bqk"}> : () -> ()
    %cst_19 = arith.constant dense<0.000000e+00> : vector<2x64x64xf32>
    %51 = tpu.matmul %49, %50, %cst_19 {dimension_numbers = #tpu.dot_dimension_numbers<[2], [2], [1], [1], [0, 0, 0, 1, 1, 1], [0], [0]>} : vector<2x64x128xbf16>, vector<2x64x128xbf16>, vector<2x64x64xf32> -> vector<2x64x64xf32>
    "tpu.trace_stop"() : () -> ()
    %cst_20 = arith.constant dense<0xFF800000> : vector<2x64xf32>
    %52 = vector.multi_reduction <maximumf>, %51, %cst_20 [2] : vector<2x64x64xf32> to vector<2x64xf32>
    %53 = vector.shape_cast %52 : vector<2x64xf32> to vector<2x64x1xf32>
    %54 = vector.broadcast %53 : vector<2x64x1xf32> to vector<2x64x64xf32>
    %55 = arith.subf %51, %54 : vector<2x64x64xf32>
    %56 = math.exp %55 : vector<2x64x64xf32>
    %cst_21 = arith.constant dense<0.000000e+00> : vector<2x64xf32>
    %57 = vector.multi_reduction <add>, %56, %cst_21 [2] : vector<2x64x64xf32> to vector<2x64xf32>
    %58 = vector.shape_cast %57 : vector<2x64xf32> to vector<2x64x1xf32>
    %59 = tpu.reciprocal %58 {approx = true} : vector<2x64x1xf32> -> vector<2x64x1xf32>
    %60 = vector.broadcast %59 : vector<2x64x1xf32> to vector<2x64x64xf32>
    %61 = arith.mulf %56, %60 : vector<2x64x64xf32>
    %62 = arith.truncf %61 : vector<2x64x64xf32> to vector<2x64x64xbf16>
    %63 = arith.truncf %48 : vector<2x64x40xf32> to vector<2x64x40xbf16>
    "tpu.trace_start"() <{level = 10 : i32, message = "bqk,bkc->bqc"}> : () -> ()
    %cst_22 = arith.constant dense<0.000000e+00> : vector<2x64x40xf32>
    %64 = tpu.matmul %62, %63, %cst_22 {dimension_numbers = #tpu.dot_dimension_numbers<[2], [1], [1], [2], [0, 0, 0, 1, 1, 2], [0], [0]>} : vector<2x64x64xbf16>, vector<2x64x40xbf16>, vector<2x64x40xf32> -> vector<2x64x40xf32>
    "tpu.trace_stop"() : () -> ()
    %65 = vector.broadcast %35 : f32 to vector<2x64x40xf32>
    %66 = arith.mulf %65, %64 : vector<2x64x40xf32>
    %67 = arith.addf %66, %1 : vector<2x64x40xf32>
    %c0_23 = arith.constant 0 : index
    %c0_24 = arith.constant 0 : index
    %c0_25 = arith.constant 0 : index
    %68 = vector.load %arg8[%c0_23, %c0_24, %c0_25] : memref<2x64x72xf32, #tpu.memory_space<vmem>>, vector<2x64x32xf32>
    tpu.vector_store %arg8[%c0_23, %c0_24, %c0_25], %34 {strides = array<i32>} : memref<2x64x72xf32, #tpu.memory_space<vmem>>, vector<2x64x32xf32>,
    %c0_26 = arith.constant 0 : index
    %c0_27 = arith.constant 0 : index
    %c32 = arith.constant 32 : index
    %69 = vector.load %arg8[%c0_26, %c0_27, %c32] : memref<2x64x72xf32, #tpu.memory_space<vmem>>, vector<2x64x40xf32>
    tpu.vector_store %arg8[%c0_26, %c0_27, %c32], %67 {strides = array<i32>} : memref<2x64x72xf32, #tpu.memory_space<vmem>>, vector<2x64x40xf32>,
    return
  }
  func.func @transform_0(%arg0: i32) -> (i32, i32, i32) {
    %c0_i32 = arith.constant 0 : i32
    %c0_i32_0 = arith.constant 0 : i32
    %c0_i32_1 = arith.constant 0 : i32
    return %arg0, %c0_i32, %c0_i32_0 : i32, i32, i32
  }
  func.func @transform_1(%arg0: i32) -> (i32, i32, i32) {
    %c0_i32 = arith.constant 0 : i32
    %c0_i32_0 = arith.constant 0 : i32
    %c0_i32_1 = arith.constant 0 : i32
    return %arg0, %c0_i32, %c0_i32_0 : i32, i32, i32
  }
  func.func @transform_2(%arg0: i32) -> (i32, i32) {
    %c0_i32 = arith.constant 0 : i32
    %c0_i32_0 = arith.constant 0 : i32
    %c0_i32_1 = arith.constant 0 : i32
    return %c0_i32, %c0_i32_0 : i32, i32
  }
  func.func @transform_3(%arg0: i32) -> (i32, i32) {
    %c0_i32 = arith.constant 0 : i32
    %c0_i32_0 = arith.constant 0 : i32
    %c0_i32_1 = arith.constant 0 : i32
    return %c0_i32, %c0_i32_0 : i32, i32
  }
  func.func @transform_4(%arg0: i32) -> (i32, i32) {
    %c0_i32 = arith.constant 0 : i32
    %c0_i32_0 = arith.constant 0 : i32
    %c0_i32_1 = arith.constant 0 : i32
    return %c0_i32, %c0_i32_0 : i32, i32
  }
  func.func @transform_5(%arg0: i32) -> (i32, i32) {
    %c0_i32 = arith.constant 0 : i32
    %c0_i32_0 = arith.constant 0 : i32
    %c0_i32_1 = arith.constant 0 : i32
    return %c0_i32, %c0_i32_0 : i32, i32
  }
  func.func @transform_6(%arg0: i32) -> i32 {
    %c0_i32 = arith.constant 0 : i32
    %c0_i32_0 = arith.constant 0 : i32
    return %c0_i32 : i32
  }
  func.func @transform_7(%arg0: i32) -> (i32, i32, i32) {
    %c0_i32 = arith.constant 0 : i32
    %c0_i32_0 = arith.constant 0 : i32
    %c0_i32_1 = arith.constant 0 : i32
    return %arg0, %c0_i32, %c0_i32_0 : i32, i32, i32
  }
}

</mosaic_0001>

<bundles_post_ra>
// kernel: mergeblock2_forward.1
= control target key start
LH: loop header
LB: loop body
LE: loop exit
PB: predicated region body
PF: predicated region fallthrough
CT: control target
= control target key end

     0   :  { %12 = vsyncpa [#allocation3], 0  ;;  %s3181_s0 = inlined_call_operand.hbm [shape: f32[2,64,32], index: 0, kind: input, shape index: {}]   ;;  %s3182_s1 = inlined_call_operand.hbm [shape: f32[2,64,40], index: 1, kind: input, shape index: {}]   ;;  %s3183_s2 = inlined_call_operand.hbm [shape: bf16[32,288], index: 2, kind: input, shape index: {}]   ;;  %s3184_s3 = inlined_call_operand.vmem [shape: f32[1,288], index: 3, kind: input, shape index: {}]   ;;  %s3185_s4 = inlined_call_operand.hbm [shape: bf16[40,296], index: 4, kind: input, shape index: {}]   ;;  %s3186_s5 = inlined_call_operand.vmem [shape: f32[1,296], index: 5, kind: input, shape index: {}]   ;;  %s3187_s6 = inlined_call_operand.vmem [shape: f32[2], index: 6, kind: input, shape index: {}]   ;;  %s3188_s7 = inlined_call_operand.hbm [shape: f32[2,64,72], index: 7, kind: output, shape index: {}]  }
   0x1   :  { %13 = vsyncpa [#allocation7], 0 }
   0x2   :  { %14 = vsyncpa [#allocation10], 0 }
   0x3   :  { %15 = vsyncpa [#allocation5], 0 }
   0x4   :  { %16 = vsyncpa [#allocation4], 0  ;;  %s34_s26 = sshll.u32 %s3182_s1, 4  ;;  %s2371_s27 = smov [#allocation6]   ;;  %s35_s26 = int_to_ptr.hbm [resolvable:$true] %s34_s26 }
   0x5   :  { %s36_s28 = sshll.u32 %s2371_s27, 4  ;;  %s21_s8 = sshll.u32 %s3181_s0, 4  ;;  %s37_s28 = int_to_ptr.vmem [resolvable:$true] %s36_s28  ;;  %s22_s8 = int_to_ptr.hbm [resolvable:$true] %s21_s8 }
   0x6   :  { %s2372_s9 = smov 128   ;;  %s2373_s10 = smov 8  }
   0x7   :  { %42 = dma.hbm_to_vmem [thread:$0]  %s35_s26, 2048, %s37_s28, [#allocation7], %s2372_s9, %s2372_s9, %s2373_s10  }
   0x8   :  { %s2374_s11 = smov [#allocation2]   ;;  %s47_s1 = sshll.u32 %s3183_s2, 4  ;;  %s48_s1 = int_to_ptr.hbm [resolvable:$true] %s47_s1 }
   0x9   :  { %s23_s12 = sshll.u32 %s2374_s11, 4  ;;  %s2375_s0 = smov [#allocation8]   ;;  %s24_s12 = int_to_ptr.vmem [resolvable:$true] %s23_s12 }
   0xa   :  { %29 = dma.hbm_to_vmem [thread:$0]  %s22_s8, 2048, %s24_s12, [#allocation3], %s2372_s9, %s2372_s9, %s2373_s10  }
   0xb   :  { %s49_s15 = sshll.u32 %s2375_s0, 4  ;;  %s62_s18 = sshll.u32 %s3185_s4, 4  ;;  %s50_s15 = int_to_ptr.vmem [resolvable:$true] %s49_s15  ;;  %s63_s18 = int_to_ptr.hbm [resolvable:$true] %s62_s18 }
   0xc   :  { %s2376_s19 = smov 192   ;;  %s2377_s20 = smov 12  }
   0xd   :  { %55 = dma.hbm_to_vmem [thread:$0]  %s48_s1, 768, %s50_s15, [#allocation7], %s2376_s19, %s2376_s19, %s2377_s20  }
   0xe   :  { %s2378_s21 = smov [#allocation9]   ;;  %s78_s24 = sshll.u32 %s3187_s6, 4  ;;  %s79_s24 = int_to_ptr.vmem [resolvable:$true] %s78_s24 }
   0xf   :  { %s64_s22 = sshll.u32 %s2378_s21, 4  ;;  %s2379_s25 = smov [#allocation11]   ;;  %s65_s22 = int_to_ptr.vmem [resolvable:$true] %s64_s22 }
  0x10   :  { %70 = dma.hbm_to_vmem [thread:$0]  %s63_s18, 960, %s65_s22, [#allocation10], %s2376_s19, %s2376_s19, %s2377_s20  }
  0x11   :  { %81 = dma.vmem_to_smem %s79_s24, 16, %s2379_s25, [#allocation5]  }
  0x12   :  { %2361 = dma.done.wait [#allocation3], 2048  }
  0x13   :  { %2362 = vsyncadd [#allocation3], 4294965248 }
  0x14   :  { %2363 = dma.done.wait [#allocation7], 2816  }
  0x15   :  { %2364 = vsyncadd [#allocation7], 4294964480 }
  0x16   :  { %2365 = dma.done.wait [#allocation10], 960  }
  0x17   :  { %2366 = vsyncadd [#allocation10], 4294966336 }
  0x18   :  { %2367 = dma.done.wait [#allocation5], 16  }
  0x19   :  { %2368 = vsyncadd [#allocation5], 4294967280 }
  0x1a   :  { %102 = sfence }
  0x1b   :  { %v2044_v0 = vld [vmem:[#allocation8 + $0x1c] sm:$0xf]  ;;  %v1944_v1 = vld [vmem:[#allocation8 + $0x24] sm:$0xf0]  ;;  %v2041_v2 = vld [vmem:[#allocation8 + $0x4] sm:$0xf] }
  0x1c   :  { %v1947_v3 = vor.u32 %v2044_v0, %v1944_v1  ;;  %v1932_v4 = vld [vmem:[#allocation8 + $0xc] sm:$0xf0]  ;;  %v104_v6 = vld [vmem:[#allocation2] sm:$0xff]  ;;  %v105_v7 = vld [vmem:[#allocation2 + $0x8] sm:$0xff]  ;;  %vm193_vm0 = vcmask 261120   ;;  %vm1055_vm1 = vcmask 1043456  }
  0x1d   :  { %v1935_v5 = vor.u32 %v2041_v2, %v1932_v4  ;;  %v2443_v8 = vpack.c.bf16 %v105_v7, %v104_v6  ;;  %v106_v9 = vld [vmem:[#allocation2 + $0x10] sm:$0xff]  ;;  %v107_v10 = vld [vmem:[#allocation2 + $0x18] sm:$0xff]  ;;  %v2045_v13 = vld [vmem:[#allocation8 + $0x20] sm:$0xf0]  ;;  %vm1030_vm2 = vcmask 326656   ;;  %vm551_vm3 = vcmask 523264  }
  0x1e   :  { %273 = vmatpush.bf16.msra.mxu1 %v1947_v3  ;;  %v2447_v11 = vpack.c.bf16 %v107_v10, %v106_v9  ;;  %v1942_v12 = vld [vmem:[#allocation8 + $0x18] sm:$0xf]  ;;  %v1930_v14 = vld [vmem:[#allocation8] sm:$0xf]  ;;  %v2042_v16 = vld [vmem:[#allocation8 + $0x8] sm:$0xf0] }
  0x1f   :  { %v1943_v15 = vor.u32 %v2045_v13, %v1942_v12  ;;  %v1931_v17 = vor.u32 %v2042_v16, %v1930_v14  ;;  %v108_v18 = vld [vmem:[#allocation2 + $0x20] sm:$0xff]  ;;  %v109_v19 = vld [vmem:[#allocation2 + $0x28] sm:$0xff]  ;;  %v110_v21 = vld [vmem:[#allocation2 + $0x30] sm:$0xff]  ;;  %s136_s27 = sld [smem:[#allocation11]]  ;;  %s2380_s30 = smov 32   ;;  %vm1889_vm4 = vcmask 589056  }
  0x20   :  { %v2453_v20 = vpack.c.bf16 %v109_v19, %v108_v18  ;;  %v111_v22 = vld [vmem:[#allocation2 + $0x38] sm:$0xff]  ;;  %v112_v24 = vld [vmem:[#allocation2 + $0x40] sm:$0xff]  ;;  %v113_v25 = vld [vmem:[#allocation2 + $0x48] sm:$0xff]  ;;  %s2381_s8 = smov [#allocation12]   ;;  %s1912_s14 = sshll.u32 %s3188_s7, 4  ;;  %s1913_s14 = int_to_ptr.hbm [resolvable:$true] %s1912_s14 }
  0x21   :  { %224 = vmatpush.bf16.msra.mxu0 %v1943_v15  ;;  %v2459_v23 = vpack.c.bf16 %v111_v22, %v110_v21  ;;  %v2465_v26 = vpack.c.bf16 %v113_v25, %v112_v24  ;;  %v114_v27 = vld [vmem:[#allocation2 + $0x50] sm:$0xff]  ;;  %v115_v28 = vld [vmem:[#allocation2 + $0x58] sm:$0xff]  ;;  %v116_v30 = vld [vmem:[#allocation2 + $0x60] sm:$0xff]  ;;  %s1910_s11 = sshll.u32 %s2381_s8, 4  ;;  %s1911_s11 = int_to_ptr.vmem [resolvable:$true] %s1910_s11 }
  0x22   :  { %274 = vmatpush.bf16.msra.mxu1 %v1935_v5  ;;  %v2471_v29 = vpack.c.bf16 %v115_v28, %v114_v27  ;;  %v117_v31 = vld [vmem:[#allocation2 + $0x68] sm:$0xff]  ;;  %v118_v33 = vld [vmem:[#allocation2 + $0x70] sm:$0xff]  ;;  %v119_v34 = vld [vmem:[#allocation2 + $0x78] sm:$0xff] }
  0x23   :  { %v2477_v32 = vpack.c.bf16 %v117_v31, %v116_v30  ;;  %v2483_v35 = vpack.c.bf16 %v119_v34, %v118_v33  ;;  %v2494_v43 = vld [vmem:[%s3184_s3] sm:$0x7] }
  0x24   :  { %v2497_v46 = vperm.slane %v2494_v43, 1  ;;  %v2512_v12 = vperm.slane %v2494_v43, 0 }
  0x25   :  { %1960 = vmatmul.msk.bf16.vlgmr.msra.gmra.mxu1 %vm193_vm0, %v2443_v8  ;;  %225 = vmatpush.bf16.msra.mxu0 %v1931_v17 }
  0x28   :  { %1952 = vmatmul.msk.bf16.vlgmr.msra.gmra.mxu0 %vm193_vm0, %v2443_v8 }
  0x35   :  { %1961 = vmatmul.msk.bf16.gmra.mxu1 %vm193_vm0, %v2447_v11 }
  0x38   :  { %1953 = vmatmul.msk.bf16.gmra.mxu0 %vm193_vm0, %v2447_v11 }
  0x45   :  { %1962 = vmatmul.msk.bf16.gmra.mxu1 %vm193_vm0, %v2453_v20 }
  0x48   :  { %1954 = vmatmul.msk.bf16.gmra.mxu0 %vm193_vm0, %v2453_v20 }
  0x55   :  { %1963 = vmatmul.msk.bf16.gmra.mxu1 %vm193_vm0, %v2459_v23 }
  0x58   :  { %1955 = vmatmul.msk.bf16.gmra.mxu0 %vm193_vm0, %v2459_v23 }
  0x65   :  { %1964 = vmatmul.msk.bf16.gmra.mxu1 %vm193_vm0, %v2465_v26 }
  0x68   :  { %1956 = vmatmul.msk.bf16.gmra.mxu0 %vm193_vm0, %v2465_v26 }
  0x75   :  { %1965 = vmatmul.msk.bf16.gmra.mxu1 %vm193_vm0, %v2471_v29 }
  0x78   :  { %1957 = vmatmul.msk.bf16.gmra.mxu0 %vm193_vm0, %v2471_v29 }
  0x85   :  { %1966 = vmatmul.msk.bf16.gmra.mxu1 %vm193_vm0, %v2477_v32 }
  0x88   :  { %1958 = vmatmul.msk.bf16.gmra.mxu0 %vm193_vm0, %v2477_v32 }
  0x95   :  { %1967 = vmatmul.msk.bf16.gmra.mxu1 %vm193_vm0, %v2483_v35 }
  0x98   :  { %1959 = vmatmul.msk.bf16.gmra.mxu0 %vm193_vm0, %v2483_v35 }
  0xa2   :  { %v276_v36 = vpop.f32.mrf.mxu1 }
  0xa3   :  { %v277_v9 = vadd.f32 %v276_v36, %v2497_v46 }
  0xa5   :  { %v227_v41 = vpop.f32.mrf.mxu0  ;;  %v381_v19 = vpack.c.bf16 %v277_v9, %v277_v9 }
  0xa6   :  { %v228_v21 = vadd.f32 %v227_v41, %v2512_v12  ;;  %v2046_v41 = vld [vmem:[#allocation8 + $0x28] sm:$0xf0] }
  0xa7   :  { %v429_v28 = vunpack.c.l.b16 %v381_v19 }
  0xa8   :  { %v365_v30 = vpack.c.bf16 %v228_v21, %v228_v21 }
  0xaa   :  { %v278_v37 = vpop.f32.mrf.mxu1 }
  0xab   :  { %v279_v6 = vadd.f32 %v278_v37, %v2497_v46 }
  0xad   :  { %v229_v45 = vpop.f32.mrf.mxu0  ;;  %v382_v13 = vpack.c.bf16 %v279_v6, %v279_v6 }
  0xae   :  { %v230_v22 = vadd.f32 %v229_v45, %v2512_v12 }
  0xaf   :  { %v430_v24 = vunpack.c.l.b16 %v382_v13 }
  0xb0   :  { %v366_v31 = vpack.c.bf16 %v230_v22, %v230_v22 }
  0xb1   :  { %v437_v33 = vpack.c.b16 %v430_v24, %v429_v28 }
  0xb2   :  { %v281_v38 = vpop.f32.mrf.mxu1 }
  0xb3   :  { %v282_v63 = vadd.f32 %v281_v38, %v2497_v46 }
  0xb5   :  { %v232_v53 = vpop.f32.mrf.mxu0  ;;  %v383_v5 = vpack.c.bf16 %v282_v63, %v282_v63 }
  0xb6   :  { %v233_v16 = vadd.f32 %v232_v53, %v2512_v12 }
  0xb7   :  { %v431_v10 = vunpack.c.l.b16 %v383_v5 }
  0xb8   :  { %v367_v25 = vpack.c.bf16 %v233_v16, %v233_v16 }
  0xba   :  { %v283_v39 = vpop.f32.mrf.mxu1  ;;  %v407_v34 = vunpack.c.l.b16 %v367_v25 }
  0xbb   :  { %v284_v61 = vadd.f32 %v283_v39, %v2497_v46  ;;  %v405_v39 = vunpack.c.l.b16 %v365_v30 }
  0xbd   :  { %v234_v1 = vpop.f32.mrf.mxu0  ;;  %v384_v2 = vpack.c.bf16 %v284_v61, %v284_v61 }
  0xbe   :  { %v235_v18 = vadd.f32 %v234_v1, %v2512_v12 }
  0xbf   :  { %v432_v7 = vunpack.c.l.b16 %v384_v2 }
  0xc0   :  { %v368_v27 = vpack.c.bf16 %v235_v18, %v235_v18 }
  0xc1   :  { %v438_v14 = vpack.c.b16 %v432_v7, %v431_v10 }
  0xc2   :  { %v286_v40 = vpop.f32.mrf.mxu1  ;;  %v408_v36 = vunpack.c.l.b16 %v368_v27 }
  0xc3   :  { %v287_v54 = vadd.f32 %v286_v40, %v2497_v46  ;;  %v406_v40 = vunpack.c.l.b16 %v366_v31 }
  0xc5   :  { %v385_v60 = vpack.c.bf16 %v287_v54, %v287_v54  ;;  %v237_v15 = vpop.f32.mrf.mxu0 }
  0xc7   :  { %v433_v0 = vunpack.c.l.b16 %v385_v60 }
  0xca   :  { %v288_v42 = vpop.f32.mrf.mxu1 }
  0xcb   :  { %v289_v51 = vadd.f32 %v288_v42, %v2497_v46  ;;  %v414_v42 = vpack.c.b16 %v408_v36, %v407_v34 }
  0xcd   :  { %v386_v57 = vpack.c.bf16 %v289_v51, %v289_v51  ;;  %v239_v38 = vpop.f32.mrf.mxu0  ;;  %v1938_v51 = vld [vmem:[#allocation8 + $0x8] sm:$0xf] }
  0xcf   :  { %v434_v62 = vunpack.c.l.b16 %v386_v57 }
  0xd1   :  { %v439_v3 = vpack.c.b16 %v434_v62, %v433_v0 }
  0xd2   :  { %v291_v44 = vpop.f32.mrf.mxu1 }
  0xd3   :  { %v292_v47 = vadd.f32 %v291_v44, %v2497_v46  ;;  %v1950_v44 = vld [vmem:[#allocation8 + $0x20] sm:$0xf] }
  0xd4   :  { %v1951_v45 = vor.u32 %v2046_v41, %v1950_v44 }
  0xd5   :  { %v387_v49 = vpack.c.bf16 %v292_v47, %v292_v47  ;;  %v413_v47 = vpack.c.b16 %v406_v40, %v405_v39  ;;  %v242_v54 = vpop.f32.mrf.mxu0 }
  0xd6   :  { %322 = vmatpush.bf16.msra.mxu2 %v1951_v45  ;;  %v243_v63 = vadd.f32 %v242_v54, %v2512_v12 }
  0xd7   :  { %v435_v55 = vunpack.c.l.b16 %v387_v49 }
  0xd8   :  { %v371_v2 = vpack.c.bf16 %v243_v63, %v243_v63 }
  0xda   :  { %v293_v48 = vpop.f32.mrf.mxu1  ;;  %v411_v6 = vunpack.c.l.b16 %v371_v2 }
  0xdb   :  { %v294_v50 = vadd.f32 %v293_v48, %v2497_v46  ;;  %v238_v48 = vadd.f32 %v237_v15, %v2512_v12 }
  0xdd   :  { %v388_v52 = vpack.c.bf16 %v294_v50, %v294_v50  ;;  %v240_v50 = vadd.f32 %v239_v38, %v2512_v12  ;;  %v244_v62 = vpop.f32.mrf.mxu0 }
  0xde   :  { %v245_v1 = vadd.f32 %v244_v62, %v2512_v12 }
  0xdf   :  { %v436_v56 = vunpack.c.l.b16 %v388_v52  ;;  %v2043_v52 = vld [vmem:[#allocation8 + $0x10] sm:$0xf0] }
  0xe0   :  { %v1939_v53 = vor.u32 %v2043_v52, %v1938_v51 }
  0xe1   :  { %v440_v58 = vpack.c.b16 %v436_v56, %v435_v55  ;;  %v369_v55 = vpack.c.bf16 %v238_v48, %v238_v48  ;;  %v370_v56 = vpack.c.bf16 %v240_v50, %v240_v50 }
  0xe2   :  { %v2503_v59 = vpop.f32.mrf.mxu1  ;;  %323 = vmatpush.bf16.msra.mxu2 %v1939_v53 }
  0xe3   :  { %449 = vmatpush.bf16.xpose.msrb.mxu0 %v440_v58  ;;  %2053 = vmatpush.bf16.xpose.msra.mxu3 %v440_v58  ;;  %v409_v57 = vunpack.c.l.b16 %v369_v55  ;;  %v410_v58 = vunpack.c.l.b16 %v370_v56 }
  0xe5   :  { %1968 = vmatmul.msk.bf16.vlgmr.msra.gmra.mxu2 %vm193_vm0, %v2443_v8  ;;  %v415_v61 = vpack.c.b16 %v410_v58, %v409_v57  ;;  %v247_v13 = vpop.f32.mrf.mxu0 }
  0xea   :  { %v2507_v4 = vpop.f32.mrf.mxu1 }
  0xeb   :  { %450 = vmatpush.bf16.xpose.msrb.mxu0 %v439_v3  ;;  %2054 = vmatpush.bf16.xpose.msra.mxu3 %v439_v3  ;;  %v372_v3 = vpack.c.bf16 %v245_v1, %v245_v1  ;;  %v299_v38 = vadd.f32 %v2507_v4, %v2497_v46 }
  0xed   :  { %v412_v7 = vunpack.c.l.b16 %v372_v3  ;;  %v249_v28 = vpop.f32.mrf.mxu0  ;;  %v390_v44 = vpack.c.bf16 %v299_v38, %v299_v38  ;;  %v1989_v38 = vld [vmem:[#allocation9 + $0xc] sm:$0xf0] }
  0xee   :  { %v250_v45 = vadd.f32 %v249_v28, %v2512_v12  ;;  %v2001_v28 = vld [vmem:[#allocation9 + $0x24] sm:$0xf0] }
  0xef   :  { %v416_v16 = vpack.c.b16 %v412_v7, %v411_v6 }
  0xf0   :  { %v374_v50 = vpack.c.bf16 %v250_v45, %v250_v45 }
  0xf2   :  { %v2515_v17 = vpop.f32.mrf.mxu1 }
  0xf3   :  { %451 = vmatpush.bf16.xpose.msrb.mxu0 %v438_v14  ;;  %2055 = vmatpush.bf16.xpose.msra.mxu3 %v438_v14  ;;  %v302_v30 = vadd.f32 %v2515_v17, %v2497_v46 }
  0xf5   :  { %1969 = vmatmul.msk.bf16.gmra.mxu2 %vm193_vm0, %v2447_v11  ;;  %v391_v36 = vpack.c.bf16 %v302_v30, %v302_v30 }
  0xf7   :  { %v508_v40 = vunpack.c.l.b16 %v391_v36  ;;  %v2047_v36 = vld [vmem:[#allocation9 + $0x4] sm:$0xf] }
  0xfa   :  { %v303_v37 = vpop.f32.mrf.mxu1 }
  0xfb   :  { %452 = vmatpush.bf16.xpose.msrb.mxu0 %v437_v33  ;;  %2056 = vmatpush.bf16.xpose.msra.mxu3 %v437_v33  ;;  %v304_v27 = vadd.f32 %v303_v37, %v2497_v46  ;;  %v297_v37 = vadd.f32 %v2503_v59, %v2497_v46  ;;  %v483_v59 = vunpack.c.l.b16 %v374_v50 }
  0xfd   :  { %v392_v33 = vpack.c.bf16 %v304_v27, %v304_v27  ;;  %v389_v17 = vpack.c.bf16 %v297_v37, %v297_v37  ;;  %v120_v37 = vld [vmem:[#allocation6] sm:$0xff] }
  0xff   :  { %v509_v39 = vunpack.c.l.b16 %v392_v33  ;;  %v506_v48 = vunpack.c.l.b16 %v389_v17 }
 0x101   :  { %v515_v41 = vpack.c.b16 %v509_v39, %v508_v40  ;;  %v1992_v39 = vor.u32 %v2047_v36, %v1989_v38  ;;  %v121_v40 = vld [vmem:[#allocation6 + $0x8] sm:$0xff] }
 0x102   :  { %v306_v49 = vpop.f32.mrf.mxu1  ;;  %453 = vmatmul.bf16.vlgmr.msrb.gmra.mxu0 %v413_v47  ;;  %458 = vmatmul.bf16.vlgmr.msra.gmra.mxu3 %v414_v42  ;;  %v252_v42 = vpop.f32.mrf.mxu0  ;;  %v248_v47 = vadd.f32 %v247_v13, %v2512_v12 }
 0x103   :  { %v307_v18 = vadd.f32 %v306_v49, %v2497_v46  ;;  %v253_v54 = vadd.f32 %v252_v42, %v2512_v12  ;;  %v2573_v42 = vpack.c.bf16 %v121_v40, %v120_v37  ;;  %v126_v40 = vld [vmem:[#allocation6 + $0x30] sm:$0xff] }
 0x104   :  { %v373_v49 = vpack.c.bf16 %v248_v47, %v248_v47 }
 0x105   :  { %v393_v25 = vpack.c.bf16 %v307_v18, %v307_v18  ;;  %1970 = vmatmul.msk.bf16.gmra.mxu2 %vm193_vm0, %v2453_v20  ;;  %v507_v20 = vunpack.c.l.b16 %v390_v44  ;;  %v375_v56 = vpack.c.bf16 %v253_v54, %v253_v54  ;;  %v2576_v44 = vperm.slane %v2494_v43, 2  ;;  %v123_v54 = vld [vmem:[#allocation6 + $0x18] sm:$0xff] }
 0x107   :  { %v510_v31 = vunpack.c.l.b16 %v393_v25  ;;  %v514_v51 = vpack.c.b16 %v507_v20, %v506_v48  ;;  %v484_v58 = vunpack.c.l.b16 %v375_v56  ;;  %v2567_v25 = vld [vmem:[#allocation9 + $0x30] sm:$0xff] }
 0x108   :  { %v1013_v27 = vunpack.c.h.b16 %v2567_v25 }
 0x10a   :  { %v308_v60 = vpop.f32.mrf.mxu1  ;;  %v254_v4 = vpop.f32.mrf.mxu0 }
 0x10b   :  { %v309_v14 = vadd.f32 %v308_v60, %v2497_v46  ;;  %v255_v55 = vadd.f32 %v254_v4, %v2512_v12 }
 0x10d   :  { %v394_v22 = vpack.c.bf16 %v309_v14, %v309_v14  ;;  %v376_v57 = vpack.c.bf16 %v255_v55, %v255_v55 }
 0x10f   :  { %v511_v11 = vunpack.c.l.b16 %v394_v22  ;;  %v485_v60 = vunpack.c.l.b16 %v376_v57 }
 0x111   :  { %v516_v34 = vpack.c.b16 %v511_v11, %v510_v31  ;;  %v491_v62 = vpack.c.b16 %v485_v60, %v484_v58  ;;  %v1022_v11 = vpack.c.b16 %v1013_v27, %v1013_v27  ;;  %v124_v27 = vld [vmem:[#allocation6 + $0x20] sm:$0xff] }
 0x112   :  { %v311_v0 = vpop.f32.mrf.mxu1  ;;  %463 = vmatmul.bf16.gmra.mxu3 %v415_v61  ;;  %v257_v53 = vpop.f32.mrf.mxu0 }
 0x113   :  { %v312_v5 = vadd.f32 %v311_v0, %v2497_v46  ;;  %v1060_v30 = vsel %vm1055_vm1, %v1022_v11, 0  ;;  %v125_v11 = vld [vmem:[#allocation6 + $0x28] sm:$0xff] }
 0x115   :  { %v395_v10 = vpack.c.bf16 %v312_v5, %v312_v5  ;;  %1971 = vmatmul.msk.bf16.gmra.mxu2 %vm193_vm0, %v2459_v23  ;;  %v258_v23 = vadd.f32 %v257_v53, %v2512_v12  ;;  %v122_v53 = vld [vmem:[#allocation6 + $0x10] sm:$0xff] }
 0x117   :  { %v512_v19 = vunpack.c.l.b16 %v395_v10  ;;  %v377_v1 = vpack.c.bf16 %v258_v23, %v258_v23 }
 0x119   :  { %v486_v3 = vunpack.c.l.b16 %v377_v1 }
 0x11a   :  { %v313_v9 = vpop.f32.mrf.mxu1  ;;  %v259_v61 = vpop.f32.mrf.mxu0 }
 0x11b   :  { %v314_v8 = vadd.f32 %v313_v9, %v2497_v46  ;;  %v482_v46 = vunpack.c.l.b16 %v373_v49  ;;  %v260_v63 = vadd.f32 %v259_v61, %v2512_v12 }
 0x11d   :  { %v396_v15 = vpack.c.bf16 %v314_v8, %v314_v8  ;;  %v490_v52 = vpack.c.b16 %v483_v59, %v482_v46  ;;  %v378_v2 = vpack.c.bf16 %v260_v63, %v260_v63 }
 0x11f   :  { %v513_v21 = vunpack.c.l.b16 %v396_v15  ;;  %v487_v5 = vunpack.c.l.b16 %v378_v2 }
 0x121   :  { %v517_v24 = vpack.c.b16 %v513_v21, %v512_v19  ;;  %v492_v6 = vpack.c.b16 %v487_v5, %v486_v3 }
 0x122   :  { %468 = vmatmul.bf16.gmra.mxu3 %v416_v16  ;;  %v262_v0 = vpop.f32.mrf.mxu0 }
 0x123   :  { %526 = vmatpush.bf16.xpose.msrb.mxu3 %v517_v24 }
 0x125   :  { %1972 = vmatmul.msk.bf16.gmra.mxu2 %vm193_vm0, %v2465_v26  ;;  %v263_v26 = vadd.f32 %v262_v0, %v2512_v12  ;;  %v2594_v0 = vpack.c.bf16 %v123_v54, %v122_v53 }
 0x127   :  { %v379_v10 = vpack.c.bf16 %v263_v26, %v263_v26 }
 0x129   :  { %v488_v13 = vunpack.c.l.b16 %v379_v10 }
 0x12a   :  { %v264_v7 = vpop.f32.mrf.mxu0 }
 0x12b   :  { %527 = vmatpush.bf16.xpose.msrb.mxu3 %v516_v34  ;;  %v265_v9 = vadd.f32 %v264_v7, %v2512_v12 }
 0x12d   :  { %v380_v8 = vpack.c.bf16 %v265_v9, %v265_v9 }
 0x12f   :  { %v489_v14 = vunpack.c.l.b16 %v380_v8 }
 0x131   :  { %v493_v15 = vpack.c.b16 %v489_v14, %v488_v13 }
 0x133   :  { %528 = vmatpush.bf16.xpose.msrb.mxu3 %v515_v41 }
 0x135   :  { %1973 = vmatmul.msk.bf16.gmra.mxu2 %vm193_vm0, %v2471_v29 }
 0x13b   :  { %529 = vmatpush.bf16.xpose.msrb.mxu3 %v514_v51 }
 0x142   :  { %530 = vmatmul.bf16.vlgmr.msrb.gmra.mxu3 %v490_v52 }
 0x143   :  { %1119 = vmatpush.bf16.msra.mxu3 %v1060_v30 }
 0x145   :  { %1974 = vmatmul.msk.bf16.gmra.mxu2 %vm193_vm0, %v2477_v32 }
 0x152   :  { %535 = vmatmul.bf16.gmra.mxu3 %v491_v62 }
 0x155   :  { %1975 = vmatmul.msk.bf16.gmra.mxu2 %vm193_vm0, %v2483_v35  ;;  %v2050_v35 = vld [vmem:[#allocation9 + $0x1c] sm:$0xf] }
 0x156   :  { %v2004_v33 = vor.u32 %v2050_v35, %v2001_v28  ;;  %v2614_v35 = vpack.c.bf16 %v125_v11, %v124_v27 }
 0x158   :  { %1120 = vmatpush.bf16.msra.mxu3 %v2004_v33 }
 0x15c   :  { %1121 = vmatpush.bf16.msra.mxu3 %v1992_v39 }
 0x162   :  { %540 = vmatmul.bf16.gmra.mxu3 %v492_v6 }
 0x168   :  { %v325_v16 = vpop.f32.mrf.mxu2 }
 0x169   :  { %v326_v57 = vadd.f32 %v325_v16, %v2576_v44 }
 0x16b   :  { %v744_v2 = vpack.c.bf16 %v326_v57, %v326_v57 }
 0x16d   :  { %v788_v8 = vunpack.c.l.b16 %v744_v2 }
 0x170   :  { %v327_v19 = vpop.f32.mrf.mxu2 }
 0x171   :  { %v328_v58 = vadd.f32 %v327_v19, %v2576_v44 }
 0x172   :  { %545 = vmatmul.bf16.gmra.mxu3 %v493_v15 }
 0x173   :  { %v745_v3 = vpack.c.bf16 %v328_v58, %v328_v58 }
 0x175   :  { %v789_v13 = vunpack.c.l.b16 %v745_v3 }
 0x178   :  { %v330_v21 = vpop.f32.mrf.mxu2 }
 0x179   :  { %v331_v49 = vadd.f32 %v330_v21, %v2576_v44 }
 0x17b   :  { %v746_v60 = vpack.c.bf16 %v331_v49, %v331_v49 }
 0x17d   :  { %v790_v7 = vunpack.c.l.b16 %v746_v60 }
 0x17f   :  { %v2604_v15 = vpop.f32.mrf.mxu0 }
 0x180   :  { %v332_v22 = vpop.f32.mrf.mxu2 }
 0x181   :  { %v333_v50 = vadd.f32 %v332_v22, %v2576_v44  ;;  %v552_v22 = vsel %vm551_vm3, %v2604_v15, -inf }
 0x182   :  { %2017 = vmatmul.msk.bf16.vlgmr.msra.gmra.mxu3 %vm1030_vm2, %v2573_v42 }
 0x183   :  { %v747_v61 = vpack.c.bf16 %v333_v50, %v333_v50 }
 0x185   :  { %v2559_v29 = vpop.f32.mrf.mxu3  ;;  %v791_v26 = vunpack.c.l.b16 %v747_v61 }
 0x187   :  { %v797_v14 = vpack.c.b16 %v791_v26, %v790_v7  ;;  %v130_v26 = vld [vmem:[#allocation6 + $0x50] sm:$0xff] }
 0x188   :  { %v335_v32 = vpop.f32.mrf.mxu2 }
 0x189   :  { %v336_v45 = vadd.f32 %v335_v32, %v2576_v44  ;;  %v796_v32 = vpack.c.b16 %v789_v13, %v788_v8 }
 0x18b   :  { %v748_v46 = vpack.c.bf16 %v336_v45, %v336_v45 }
 0x18d   :  { %v2561_v18 = vpop.f32.mrf.mxu3  ;;  %v792_v62 = vunpack.c.l.b16 %v748_v46 }
 0x190   :  { %v337_v34 = vpop.f32.mrf.mxu2 }
 0x191   :  { %v338_v20 = vadd.f32 %v337_v34, %v2576_v44  ;;  %v2622_v34 = vpop.f32.mrf.mxu0 }
 0x192   :  { %2018 = vmatmul.msk.bf16.gmra.mxu3 %vm1030_vm2, %v2594_v0  ;;  %v555_v37 = vsel %vm551_vm3, %v2622_v34, -inf }
 0x193   :  { %v749_v59 = vpack.c.bf16 %v338_v20, %v338_v20 }
 0x195   :  { %v2563_v12 = vpop.f32.mrf.mxu3  ;;  %v793_v23 = vunpack.c.l.b16 %v749_v59  ;;  %v128_v59 = vld [vmem:[#allocation6 + $0x40] sm:$0xff] }
 0x197   :  { %v798_v10 = vpack.c.b16 %v793_v23, %v792_v62 }
 0x198   :  { %v340_v17 = vpop.f32.mrf.mxu2 }
 0x199   :  { %v341_v47 = vadd.f32 %v340_v17, %v2576_v44  ;;  %v127_v17 = vld [vmem:[#allocation6 + $0x38] sm:$0xff] }
 0x19a   :  { %v2631_v20 = vpack.c.bf16 %v127_v17, %v126_v40 }
 0x19b   :  { %v750_v48 = vpack.c.bf16 %v341_v47, %v341_v47  ;;  %v1012_v47 = vunpack.c.l.b16 %v2567_v25 }
 0x19d   :  { %v2565_v24 = vpop.f32.mrf.mxu3  ;;  %v794_v55 = vunpack.c.l.b16 %v750_v48  ;;  %v1021_v45 = vpack.c.b16 %v1012_v47, %v1012_v47 }
 0x19f   :  { %v1057_v48 = vsel %vm1055_vm1, %v1021_v45, 0  ;;  %v132_v45 = vld [vmem:[#allocation6 + $0x60] sm:$0xff] }
 0x1a0   :  { %v342_v43 = vpop.f32.mrf.mxu2  ;;  %1070 = vmatpush.bf16.msrb.mxu2 %v1057_v48  ;;  %v133_v48 = vld [vmem:[#allocation6 + $0x68] sm:$0xff] }
 0x1a1   :  { %v343_v52 = vadd.f32 %v342_v43, %v2576_v44 }
 0x1a2   :  { %2019 = vmatmul.msk.bf16.gmra.mxu3 %vm1030_vm2, %v2614_v35 }
 0x1a3   :  { %v751_v56 = vpack.c.bf16 %v343_v52, %v343_v52  ;;  %v129_v52 = vld [vmem:[#allocation6 + $0x48] sm:$0xff] }
 0x1a4   :  { %v2644_v53 = vpack.c.bf16 %v129_v52, %v128_v59  ;;  %v135_v52 = vld [vmem:[#allocation6 + $0x78] sm:$0xff] }
 0x1a5   :  { %v2571_v31 = vpop.f32.mrf.mxu3  ;;  %v795_v63 = vunpack.c.l.b16 %v751_v56 }
 0x1a7   :  { %v799_v1 = vpack.c.b16 %v795_v63, %v794_v55 }
 0x1a8   :  { %v2598_v6 = vpop.f32.mrf.mxu2 }
 0x1a9   :  { %820 = vmatpush.bf16.msra.mxu0 %v799_v1  ;;  %v558_v1 = vsel %vm551_vm3, %v2559_v29, -inf  ;;  %v346_v13 = vadd.f32 %v2598_v6, %v2576_v44 }
 0x1ad   :  { %v2578_v41 = vpop.f32.mrf.mxu3  ;;  %821 = vmatpush.bf16.msra.mxu0 %v798_v10 }
 0x1b0   :  { %v2608_v19 = vpop.f32.mrf.mxu2 }
 0x1b1   :  { %822 = vmatpush.bf16.msra.mxu0 %v797_v14  ;;  %v348_v14 = vadd.f32 %v2608_v19, %v2576_v44 }
 0x1b2   :  { %2020 = vmatmul.msk.bf16.gmra.mxu3 %vm1030_vm2, %v2631_v20 }
 0x1b5   :  { %823 = vmatpush.bf16.msra.mxu0 %v796_v32 }
 0x1b8   :  { %v350_v30 = vpop.f32.mrf.mxu2 }
 0x1b9   :  { %v351_v62 = vadd.f32 %v350_v30, %v2576_v44 }
 0x1c0   :  { %v352_v38 = vpop.f32.mrf.mxu2 }
 0x1c1   :  { %v353_v23 = vadd.f32 %v352_v38, %v2576_v44  ;;  %v752_v38 = vpack.c.bf16 %v346_v13, %v346_v13 }
 0x1c2   :  { %2021 = vmatmul.msk.bf16.gmra.mxu3 %vm1030_vm2, %v2644_v53 }
 0x1c3   :  { %v873_v17 = vunpack.c.l.b16 %v752_v38 }
 0x1c5   :  { %v2587_v51 = vpop.f32.mrf.mxu3 }
 0x1c6   :  { %v576_v4 = vsel %vm551_vm3, %v2587_v51, -inf }
 0x1c7   :  { %577 = vmax.xlane.f32.xlu0 %v576_v4 }
 0x1c8   :  { %v355_v50 = vpop.f32.mrf.mxu2 }
 0x1c9   :  { %v356_v58 = vadd.f32 %v355_v50, %v2576_v44  ;;  %v2668_v50 = vpack.c.bf16 %v133_v48, %v132_v45 }
 0x1cb   :  { %v756_v2 = vpack.c.bf16 %v356_v58, %v356_v58 }
 0x1cd   :  { %v2596_v5 = vpop.f32.mrf.mxu3  ;;  %v877_v32 = vunpack.c.l.b16 %v756_v2 }
 0x1ce   :  { %v579_v9 = vsel %vm551_vm3, %v2596_v5, -inf }
 0x1cf   :  { %580 = vmax.xlane.f32.xlu0 %v579_v9  ;;  %v131_v9 = vld [vmem:[#allocation6 + $0x58] sm:$0xff] }
 0x1d0   :  { %v357_v46 = vpop.f32.mrf.mxu2  ;;  %v2664_v30 = vpack.c.bf16 %v131_v9, %v130_v26 }
 0x1d1   :  { %v358_v60 = vadd.f32 %v357_v46, %v2576_v44  ;;  %v2051_v46 = vld [vmem:[#allocation9 + $0x20] sm:$0xf0] }
 0x1d2   :  { %2022 = vmatmul.msk.bf16.gmra.mxu3 %vm1030_vm2, %v2664_v30 }
 0x1d3   :  { %v757_v3 = vpack.c.bf16 %v358_v60, %v358_v60  ;;  %v2680_v60 = vld [vmem:[%s3186_s5] sm:$0x7] }
 0x1d5   :  { %v2606_v16 = vpop.f32.mrf.mxu3  ;;  %v878_v27 = vunpack.c.l.b16 %v757_v3 }
 0x1d6   :  { %v582_v21 = vsel %vm551_vm3, %v2606_v16, -inf }
 0x1d7   :  { %583 = vmax.xlane.f32.xlu1 %v582_v21  ;;  %553 = vmax.xlane.f32.xlu0 %v552_v22  ;;  %v754_v21 = vpack.c.bf16 %v351_v62, %v351_v62  ;;  %v755_v22 = vpack.c.bf16 %v353_v23, %v353_v23  ;;  %v883_v6 = vpack.c.b16 %v878_v27, %v877_v32  ;;  %v2683_v23 = vperm.slane %v2680_v60, 1 }
 0x1d8   :  { %v360_v55 = vpop.f32.mrf.mxu2  ;;  %v561_v32 = vsel %vm551_vm3, %v2561_v18, -inf }
 0x1d9   :  { %v361_v57 = vadd.f32 %v360_v55, %v2576_v44  ;;  %v876_v40 = vunpack.c.l.b16 %v755_v22 }
 0x1db   :  { %v758_v61 = vpack.c.bf16 %v361_v57, %v361_v57 }
 0x1dd   :  { %v2616_v28 = vpop.f32.mrf.mxu3  ;;  %v879_v10 = vunpack.c.l.b16 %v758_v61 }
 0x1de   :  { %v585_v33 = vsel %vm551_vm3, %v2616_v28, -inf }
 0x1df   :  { %586 = vmax.xlane.f32.xlu1 %v585_v33 }
 0x1e0   :  { %v362_v63 = vpop.f32.mrf.mxu2 }
 0x1e1   :  { %v363_v7 = vadd.f32 %v362_v63, %v2576_v44 }
 0x1e2   :  { %2023 = vmatmul.msk.bf16.gmra.mxu3 %vm1030_vm2, %v2668_v50 }
 0x1e3   :  { %v759_v8 = vpack.c.bf16 %v363_v7, %v363_v7 }
 0x1e5   :  { %v2624_v36 = vpop.f32.mrf.mxu3  ;;  %v880_v11 = vunpack.c.l.b16 %v759_v8 }
 0x1e6   :  { %v588_v39 = vsel %vm551_vm3, %v2624_v36, -inf }
 0x1e7   :  { %589 = vmax.xlane.f32.xlu2 %v588_v39  ;;  %556 = vmax.xlane.f32.xlu1 %v555_v37  ;;  %v884_v33 = vpack.c.b16 %v880_v11, %v879_v10  ;;  %v753_v39 = vpack.c.bf16 %v348_v14, %v348_v14  ;;  %v875_v37 = vunpack.c.l.b16 %v754_v21  ;;  %v1987_v11 = vld [vmem:[#allocation9] sm:$0xf] }
 0x1e9   :  { %905 = vmatpush.bf16.msrb.mxu1 %v884_v33  ;;  %v874_v47 = vunpack.c.l.b16 %v753_v39  ;;  %v882_v44 = vpack.c.b16 %v876_v40, %v875_v37  ;;  %v2048_v33 = vld [vmem:[#allocation9 + $0x8] sm:$0xf0] }
 0x1ea   :  { %v1988_v39 = vor.u32 %v2048_v33, %v1987_v11 }
 0x1eb   :  { %v881_v19 = vpack.c.b16 %v874_v47, %v873_v17 }
 0x1ed   :  { %v2634_v49 = vpop.f32.mrf.mxu3  ;;  %906 = vmatpush.bf16.msrb.mxu1 %v883_v6 }
 0x1ee   :  { %v591_v43 = vsel %vm551_vm3, %v2634_v49, -inf }
 0x1ef   :  { %592 = vmax.xlane.f32.xlu2 %v591_v43  ;;  %v1999_v43 = vld [vmem:[#allocation9 + $0x18] sm:$0xf] }
 0x1f0   :  { %v2000_v59 = vor.u32 %v2051_v46, %v1999_v43 }
 0x1f1   :  { %907 = vmatpush.bf16.msrb.mxu1 %v882_v44  ;;  %v564_v44 = vsel %vm551_vm3, %v2563_v12, -inf }
 0x1f2   :  { %1071 = vmatpush.bf16.msrb.mxu2 %v2000_v59  ;;  %v567_v59 = vsel %vm551_vm3, %v2565_v24, -inf }
 0x1f5   :  { %v2640_v4 = vpop.f32.mrf.mxu3  ;;  %908 = vmatpush.bf16.msrb.mxu1 %v881_v19 }
 0x1f6   :  { %v594_v25 = vsel %vm551_vm3, %v2640_v4, -inf  ;;  %1072 = vmatpush.bf16.msrb.mxu2 %v1988_v39 }
 0x1f7   :  { %595 = vmax.xlane.f32.xlu2 %v594_v25  ;;  %v134_v25 = vld [vmem:[#allocation6 + $0x70] sm:$0xff] }
 0x1f8   :  { %v2672_v55 = vpack.c.bf16 %v135_v52, %v134_v25 }
 0x1f9   :  { %2009 = vmatmul.msk.bf16.vlgmr.msrb.gmra.mxu2 %vm1030_vm2, %v2573_v42 }
 0x1fa   :  { %2024 = vmatmul.msk.bf16.gmra.mxu3 %vm1030_vm2, %v2672_v55 }
 0x1fd   :  { %v2646_v54 = vpop.f32.mrf.mxu3 }
 0x1fe   :  { %v597_v56 = vsel %vm551_vm3, %v2646_v54, -inf }
 0x1ff   :  { %598 = vmax.xlane.f32.xlu0 %v597_v56 }
 0x205   :  { %v1123_v61 = vpop.f32.mrf.mxu3 }
 0x207   :  { %559 = vmax.xlane.f32.xlu0 %v558_v1  ;;  %v1124_v1 = vadd.f32 %v1123_v61, %v2683_v23 }
 0x209   :  { %v1228_v7 = vpack.c.bf16 %v1124_v1, %v1124_v1  ;;  %v570_v1 = vsel %vm551_vm3, %v2571_v31, -inf  ;;  %2010 = vmatmul.msk.bf16.gmra.mxu2 %vm1030_vm2, %v2594_v0 }
 0x20b   :  { %v2693_v13 = vunpack.c.l.b16 %v1228_v7 }
 0x20d   :  { %v1125_v26 = vpop.f32.mrf.mxu3 }
 0x20e   :  { %v1126_v10 = vadd.f32 %v1125_v26, %v2683_v23 }
 0x215   :  { %v2705_v38 = vpop.f32.mrf.mxu3 }
 0x219   :  { %2011 = vmatmul.msk.bf16.gmra.mxu2 %vm1030_vm2, %v2614_v35 }
 0x21d   :  { %v2716_v19 = vpop.f32.mrf.mxu3 }
 0x229   :  { %2012 = vmatmul.msk.bf16.gmra.mxu2 %vm1030_vm2, %v2631_v20 }
 0x239   :  { %2013 = vmatmul.msk.bf16.gmra.mxu2 %vm1030_vm2, %v2644_v53 }
 0x23a   :  { %v578_v56 = vpop.xlane.xlu0 %577 }
 0x23b   :  { %v608_v57 = vsub.f32 %v2587_v51, %v578_v56  ;;  %v1133_v56 = vpop.f32.mrf.mxu3 }
 0x23d   :  { %v632_v58 = vmul.f32 1.442695, %v608_v57 }
 0x23f   :  { %2068 = vpow2.f32 %v632_v58 }
 0x242   :  { %v581_v62 = vpop.xlane.xlu0 %580 }
 0x243   :  { %v609_v63 = vsub.f32 %v2596_v5, %v581_v62  ;;  %v1229_v5 = vpack.c.bf16 %v1126_v10, %v1126_v10 }
 0x245   :  { %v2687_v2 = vpop.eup %2068  ;;  %v634_v3 = vmul.f32 1.442695, %v609_v63  ;;  %v2701_v27 = vunpack.c.l.b16 %v1229_v5 }
 0x246   :  { %v672_v51 = vsel %vm551_vm3, %v2687_v2, 0.0 }
 0x247   :  { %2070 = vpow2.f32 %v634_v3  ;;  %673 = vadd.xlane.f32.xlu1 %v672_v51 }
 0x249   :  { %2014 = vmatmul.msk.bf16.gmra.mxu2 %vm1030_vm2, %v2664_v30 }
 0x24a   :  { %v584_v9 = vpop.xlane.xlu1 %583  ;;  %v554_v57 = vpop.xlane.xlu0 %553 }
 0x24b   :  { %v610_v8 = vsub.f32 %v2606_v16, %v584_v9  ;;  %v1284_v16 = vpack.c.b16 %v2701_v27, %v2693_v13  ;;  %v600_v63 = vsub.f32 %v2604_v15, %v554_v57 }
 0x24d   :  { %v2695_v14 = vpop.eup %2070  ;;  %v636_v21 = vmul.f32 1.442695, %v610_v8  ;;  %v616_v51 = vmul.f32 1.442695, %v600_v63  ;;  %v573_v8 = vsel %vm551_vm3, %v2578_v41, -inf }
 0x24e   :  { %v675_v22 = vsel %vm551_vm3, %v2695_v14, 0.0 }
 0x24f   :  { %2072 = vpow2.f32 %v636_v21  ;;  %676 = vadd.xlane.f32.xlu2 %v675_v22  ;;  %562 = vmax.xlane.f32.xlu1 %v561_v32 }
 0x252   :  { %v587_v37 = vpop.xlane.xlu1 %586 }
 0x253   :  { %v611_v40 = vsub.f32 %v2616_v28, %v587_v37 }
 0x255   :  { %v2708_v6 = vpop.eup %2072  ;;  %v638_v17 = vmul.f32 1.442695, %v611_v40 }
 0x256   :  { %v678_v47 = vsel %vm551_vm3, %v2708_v6, 0.0 }
 0x257   :  { %2074 = vpow2.f32 %v638_v17  ;;  %679 = vadd.xlane.f32.xlu2 %v678_v47  ;;  %565 = vmax.xlane.f32.xlu1 %v564_v44 }
 0x259   :  { %2015 = vmatmul.msk.bf16.gmra.mxu2 %vm1030_vm2, %v2668_v50 }
 0x25a   :  { %v590_v45 = vpop.xlane.xlu2 %589  ;;  %v557_v48 = vpop.xlane.xlu1 %556 }
 0x25b   :  { %v612_v28 = vsub.f32 %v2624_v36, %v590_v45  ;;  %v601_v25 = vsub.f32 %v2622_v34, %v557_v48  ;;  %v1134_v45 = vadd.f32 %v1133_v56, %v2683_v23 }
 0x25d   :  { %v2719_v43 = vpop.eup %2074  ;;  %v640_v46 = vmul.f32 1.442695, %v612_v28  ;;  %v618_v58 = vmul.f32 1.442695, %v601_v25 }
 0x25e   :  { %v681_v52 = vsel %vm551_vm3, %v2719_v43, 0.0 }
 0x25f   :  { %2076 = vpow2.f32 %v640_v46  ;;  %568 = vmax.xlane.f32.xlu2 %v567_v59  ;;  %682 = vadd.xlane.f32.xlu0 %v681_v52 }
 0x260   :  { %2078 = vpow2.f32 %v618_v58  ;;  %v1232_v58 = vpack.c.bf16 %v1134_v45, %v1134_v45 }
 0x262   :  { %v593_v61 = vpop.xlane.xlu2 %592 }
 0x263   :  { %v613_v36 = vsub.f32 %v2634_v49, %v593_v61  ;;  %v1135_v49 = vpop.f32.mrf.mxu3 }
 0x264   :  { %v1136_v28 = vadd.f32 %v1135_v49, %v2683_v23 }
 0x265   :  { %v2727_v62 = vpop.eup %2076  ;;  %v642_v34 = vmul.f32 1.442695, %v613_v36 }
 0x266   :  { %v684_v3 = vsel %vm551_vm3, %v2727_v62, 0.0  ;;  %v2737_v15 = vpop.eup %2078  ;;  %v1233_v36 = vpack.c.bf16 %v1136_v28, %v1136_v28 }
 0x267   :  { %2080 = vpow2.f32 %v642_v34  ;;  %571 = vmax.xlane.f32.xlu2 %v570_v1  ;;  %685 = vadd.xlane.f32.xlu0 %v684_v3  ;;  %v651_v21 = vsel %vm551_vm3, %v2737_v15, 0.0  ;;  %v1129_v1 = vadd.f32 %v2705_v38, %v2683_v23  ;;  %v1280_v3 = vunpack.c.l.b16 %v1232_v58 }
 0x268   :  { %2082 = vpow2.f32 %v616_v51  ;;  %v1281_v51 = vunpack.c.l.b16 %v1233_v36 }
 0x269   :  { %2016 = vmatmul.msk.bf16.gmra.mxu2 %vm1030_vm2, %v2672_v55 }
 0x26a   :  { %v596_v7 = vpop.xlane.xlu2 %595 }
 0x26b   :  { %v614_v26 = vsub.f32 %v2640_v4, %v596_v7  ;;  %v1138_v4 = vpop.f32.mrf.mxu3 }
 0x26c   :  { %v1139_v33 = vadd.f32 %v1138_v4, %v2683_v23 }
 0x26d   :  { %v2739_v9 = vpop.eup %2080  ;;  %v644_v10 = vmul.f32 1.442695, %v614_v26  ;;  %v1230_v26 = vpack.c.bf16 %v1129_v1, %v1129_v1 }
 0x26e   :  { %v687_v5 = vsel %vm551_vm3, %v2739_v9, 0.0  ;;  %v2747_v32 = vpop.eup %2082  ;;  %v1234_v47 = vpack.c.bf16 %v1139_v33, %v1139_v33 }
 0x26f   :  { %2084 = vpow2.f32 %v644_v10  ;;  %574 = vmax.xlane.f32.xlu0 %v573_v8  ;;  %688 = vadd.xlane.f32.xlu1 %v687_v5  ;;  %v648_v17 = vsel %vm551_vm3, %v2747_v32, 0.0  ;;  %v1286_v8 = vpack.c.b16 %v1281_v51, %v1280_v3 }
 0x270   :  { %652 = vadd.xlane.f32.xlu2 %v651_v21  ;;  %v1282_v25 = vunpack.c.l.b16 %v1234_v47 }
 0x272   :  { %v599_v22 = vpop.xlane.xlu0 %598 }
 0x273   :  { %v615_v11 = vsub.f32 %v2646_v54, %v599_v22  ;;  %v1140_v44 = vpop.f32.mrf.mxu3 }
 0x274   :  { %v1141_v48 = vadd.f32 %v1140_v44, %v2683_v23 }
 0x275   :  { %v2751_v39 = vpop.eup %2084  ;;  %v646_v37 = vmul.f32 1.442695, %v615_v11 }
 0x276   :  { %v690_v40 = vsel %vm551_vm3, %v2751_v39, 0.0  ;;  %v1235_v59 = vpack.c.bf16 %v1141_v48, %v1141_v48 }
 0x277   :  { %2086 = vpow2.f32 %v646_v37  ;;  %691 = vadd.xlane.f32.xlu0 %v690_v40  ;;  %649 = vadd.xlane.f32.xlu1 %v648_v17 }
 0x278   :  { %v1283_v63 = vunpack.c.l.b16 %v1235_v59 }
 0x27a   :  { %v560_v54 = vpop.xlane.xlu0 %559  ;;  %v1287_v56 = vpack.c.b16 %v1283_v63, %v1282_v25 }
 0x27b   :  { %v602_v46 = vsub.f32 %v2559_v29, %v560_v54  ;;  %v1143_v34 = vpop.f32.mrf.mxu3  ;;  %v1131_v29 = vadd.f32 %v2716_v19, %v2683_v23  ;;  %v1278_v19 = vunpack.c.l.b16 %v1230_v26 }
 0x27c   :  { %1296 = vmatpush.bf16.xpose.msra.mxu1 %v1287_v56  ;;  %v1144_v49 = vadd.f32 %v1143_v34, %v2683_v23 }
 0x27d   :  { %v2763_v52 = vpop.eup %2086  ;;  %v620_v57 = vmul.f32 1.442695, %v602_v46  ;;  %v1231_v10 = vpack.c.bf16 %v1131_v29, %v1131_v29 }
 0x27e   :  { %v693_v61 = vsel %vm551_vm3, %v2763_v52, 0.0  ;;  %v1236_v38 = vpack.c.bf16 %v1144_v49, %v1144_v49 }
 0x27f   :  { %2088 = vpow2.f32 %v620_v57  ;;  %694 = vadd.xlane.f32.xlu1 %v693_v61  ;;  %v1279_v4 = vunpack.c.l.b16 %v1231_v10 }
 0x280   :  { %v2779_v11 = vunpack.c.l.b16 %v1236_v38 }
 0x281   :  { %v1285_v37 = vpack.c.b16 %v1279_v4, %v1278_v19 }
 0x283   :  { %v1145_v21 = vpop.f32.mrf.mxu3 }
 0x284   :  { %v1146_v22 = vadd.f32 %v1145_v21, %v2683_v23  ;;  %1297 = vmatpush.bf16.xpose.msra.mxu1 %v1286_v8 }
 0x285   :  { %v2772_v7 = vpop.eup %2088 }
 0x286   :  { %v654_v5 = vsel %vm551_vm3, %v2772_v7, 0.0  ;;  %v1237_v33 = vpack.c.bf16 %v1146_v22, %v1146_v22 }
 0x287   :  { %655 = vadd.xlane.f32.xlu2 %v654_v5 }
 0x288   :  { %v2781_v40 = vunpack.c.l.b16 %v1237_v33 }
 0x28a   :  { %v1361_v17 = vpack.c.b16 %v2781_v40, %v2779_v11 }
 0x28b   :  { %v1148_v47 = vpop.f32.mrf.mxu3 }
 0x28c   :  { %1298 = vmatpush.bf16.xpose.msra.mxu1 %v1285_v37 }
 0x293   :  { %v1150_v44 = vpop.f32.mrf.mxu3 }
 0x294   :  { %1299 = vmatpush.bf16.xpose.msra.mxu1 %v1284_v16  ;;  %v1151_v37 = vadd.f32 %v1150_v44, %v2683_v23 }
 0x296   :  { %v1239_v44 = vpack.c.bf16 %v1151_v37, %v1151_v37 }
 0x29b   :  { %v1153_v54 = vpop.f32.mrf.mxu3 }
 0x29c   :  { %v1154_v1 = vadd.f32 %v1153_v54, %v2683_v23 }
 0x29e   :  { %v1240_v4 = vpack.c.bf16 %v1154_v1, %v1154_v1  ;;  %v2819_v1 = vpop.f32.mrf.mxu2 }
 0x2a3   :  { %v1155_v45 = vpop.f32.mrf.mxu3 }
 0x2a4   :  { %v1156_v51 = vadd.f32 %v1155_v45, %v2683_v23 }
 0x2ab   :  { %v1158_v28 = vpop.f32.mrf.mxu3 }
 0x2ac   :  { %v1159_v13 = vadd.f32 %v1158_v28, %v2683_v23 }
 0x2ae   :  { %v1242_v36 = vpack.c.bf16 %v1159_v13, %v1159_v13 }
 0x2b0   :  { %v1359_v26 = vunpack.c.l.b16 %v1242_v36 }
 0x2b3   :  { %v1160_v46 = vpop.f32.mrf.mxu3 }
 0x2b4   :  { %v1161_v27 = vadd.f32 %v1160_v46, %v2683_v23 }
 0x2b6   :  { %v1243_v63 = vpack.c.bf16 %v1161_v27, %v1161_v27 }
 0x2ba   :  { %v674_v48 = vpop.xlane.xlu1 %673 }
 0x2bb   :  { %2090 = vrcp.f32 %v674_v48  ;;  %v1357_v48 = vunpack.c.l.b16 %v1240_v4  ;;  %v1076_v4 = vpop.f32.mrf.mxu2 }
 0x2c1   :  { %v2091_v57 = vpop.eup %2090 }
 0x2c2   :  { %v677_v25 = vpop.xlane.xlu2 %676  ;;  %v563_v59 = vpop.xlane.xlu1 %562  ;;  %v720_v61 = vmul.f32 %v2091_v57, %v2687_v2  ;;  %v1360_v2 = vunpack.c.l.b16 %v1243_v63 }
 0x2c3   :  { %2092 = vrcp.f32 %v677_v25  ;;  %v603_v58 = vsub.f32 %v2561_v18, %v563_v59 }
 0x2c4   :  { %v736_v34 = vpack.c.bf16 %v720_v61, %v720_v61  ;;  %v1364_v22 = vpack.c.b16 %v1360_v2, %v1359_v26 }
 0x2c5   :  { %v622_v16 = vmul.f32 1.442695, %v603_v58 }
 0x2c6   :  { %v853_v38 = vunpack.c.l.b16 %v736_v34 }
 0x2c7   :  { %2094 = vpow2.f32 %v622_v16 }
 0x2c9   :  { %v2093_v56 = vpop.eup %2092 }
 0x2ca   :  { %v721_v29 = vmul.f32 %v2093_v56, %v2695_v14  ;;  %v680_v18 = vpop.xlane.xlu2 %679  ;;  %v566_v3 = vpop.xlane.xlu1 %565  ;;  %v1241_v14 = vpack.c.bf16 %v1156_v51, %v1156_v51  ;;  %v1356_v56 = vunpack.c.l.b16 %v1239_v44 }
 0x2cb   :  { %v604_v49 = vsub.f32 %v2563_v12, %v566_v3  ;;  %2096 = vrcp.f32 %v680_v18  ;;  %v1149_v12 = vadd.f32 %v1148_v47, %v2683_v23 }
 0x2cc   :  { %v737_v10 = vpack.c.bf16 %v721_v29, %v721_v29  ;;  %v1358_v46 = vunpack.c.l.b16 %v1241_v14 }
 0x2cd   :  { %v2804_v8 = vpop.eup %2094  ;;  %v624_v5 = vmul.f32 1.442695, %v604_v49  ;;  %v1238_v23 = vpack.c.bf16 %v1149_v12, %v1149_v12 }
 0x2ce   :  { %v854_v21 = vunpack.c.l.b16 %v737_v10  ;;  %v657_v19 = vsel %vm551_vm3, %v2804_v8, 0.0  ;;  %v1363_v13 = vpack.c.b16 %v1358_v46, %v1357_v48 }
 0x2cf   :  { %2098 = vpow2.f32 %v624_v5  ;;  %658 = vadd.xlane.f32.xlu0 %v657_v19  ;;  %v1355_v63 = vunpack.c.l.b16 %v1238_v23 }
 0x2d0   :  { %v861_v33 = vpack.c.b16 %v854_v21, %v853_v38 }
 0x2d1   :  { %v2097_v28 = vpop.eup %2096  ;;  %v1362_v26 = vpack.c.b16 %v1356_v56, %v1355_v63 }
 0x2d2   :  { %v569_v54 = vpop.xlane.xlu2 %568  ;;  %v683_v45 = vpop.xlane.xlu0 %682  ;;  %1980 = vmatmul.msk.bf16.vlgmr.msrb.gmra.mxu1 %vm551_vm3, %v861_v33  ;;  %v722_v47 = vmul.f32 %v2097_v28, %v2708_v6 }
 0x2d3   :  { %v605_v25 = vsub.f32 %v2565_v24, %v569_v54  ;;  %2100 = vrcp.f32 %v683_v45  ;;  %1373 = vmatpush.bf16.xpose.msrb.mxu1 %v1364_v22 }
 0x2d4   :  { %v738_v36 = vpack.c.bf16 %v722_v47, %v722_v47 }
 0x2d5   :  { %v2812_v59 = vpop.eup %2098  ;;  %v626_v57 = vmul.f32 1.442695, %v605_v25 }
 0x2d6   :  { %v660_v58 = vsel %vm551_vm3, %v2812_v59, 0.0  ;;  %v855_v51 = vunpack.c.l.b16 %v738_v36 }
 0x2d7   :  { %2102 = vpow2.f32 %v626_v57  ;;  %661 = vadd.xlane.f32.xlu1 %v660_v58 }
 0x2d9   :  { %v2101_v27 = vpop.eup %2100 }
 0x2da   :  { %v572_v16 = vpop.xlane.xlu2 %571  ;;  %v686_v61 = vpop.xlane.xlu0 %685  ;;  %v723_v24 = vmul.f32 %v2101_v27, %v2719_v43 }
 0x2db   :  { %v606_v34 = vsub.f32 %v2571_v31, %v572_v16  ;;  %1374 = vmatpush.bf16.xpose.msrb.mxu1 %v1363_v13  ;;  %2104 = vrcp.f32 %v686_v61 }
 0x2dc   :  { %v739_v29 = vpack.c.bf16 %v723_v24, %v723_v24 }
 0x2dd   :  { %v2821_v6 = vpop.eup %2102  ;;  %v628_v18 = vmul.f32 1.442695, %v606_v34 }
 0x2de   :  { %v663_v3 = vsel %vm551_vm3, %v2821_v6, 0.0  ;;  %v856_v49 = vunpack.c.l.b16 %v739_v29 }
 0x2df   :  { %2106 = vpow2.f32 %v628_v18  ;;  %664 = vadd.xlane.f32.xlu2 %v663_v3  ;;  %v2847_v18 = vperm.slane %v2680_v60, 0 }
 0x2e0   :  { %v862_v43 = vpack.c.b16 %v856_v49, %v855_v51 }
 0x2e1   :  { %v2105_v10 = vpop.eup %2104  ;;  %v1075_v3 = vadd.f32 %v2819_v1, %v2847_v18  ;;  %v1077_v51 = vadd.f32 %v1076_v4, %v2847_v18 }
 0x2e2   :  { %v575_v2 = vpop.xlane.xlu0 %574  ;;  %1981 = vmatmul.msk.bf16.gmra.mxu1 %vm551_vm3, %v862_v43  ;;  %v689_v31 = vpop.xlane.xlu1 %688  ;;  %v724_v22 = vmul.f32 %v2105_v10, %v2727_v62 }
 0x2e3   :  { %v607_v5 = vsub.f32 %v2578_v41, %v575_v2  ;;  %v653_v38 = vpop.xlane.xlu2 %652  ;;  %2108 = vrcp.f32 %v689_v31  ;;  %1375 = vmatpush.bf16.xpose.msrb.mxu1 %v1362_v26  ;;  %v1212_v49 = vpack.c.bf16 %v1075_v3, %v1075_v3 }
 0x2e4   :  { %2110 = vrcp.f32 %v653_v38  ;;  %v740_v54 = vpack.c.bf16 %v724_v22, %v724_v22 }
 0x2e5   :  { %v2827_v21 = vpop.eup %2106  ;;  %v630_v19 = vmul.f32 1.442695, %v607_v5  ;;  %v1252_v26 = vunpack.c.l.b16 %v1212_v49 }
 0x2e6   :  { %v666_v14 = vsel %vm551_vm3, %v2827_v21, 0.0  ;;  %v857_v46 = vunpack.c.l.b16 %v740_v54 }
 0x2e7   :  { %2112 = vpow2.f32 %v630_v19  ;;  %667 = vadd.xlane.f32.xlu0 %v666_v14 }
 0x2e9   :  { %v2109_v33 = vpop.eup %2108 }
 0x2ea   :  { %v692_v12 = vpop.xlane.xlu0 %691  ;;  %v650_v37 = vpop.xlane.xlu1 %649  ;;  %v725_v41 = vmul.f32 %v2109_v33, %v2739_v9 }
 0x2eb   :  { %1376 = vmatpush.bf16.xpose.msrb.mxu1 %v1361_v17  ;;  %v2111_v45 = vpop.eup %2110  ;;  %2114 = vrcp.f32 %v650_v37  ;;  %v1079_v9 = vpop.f32.mrf.mxu2 }
 0x2ec   :  { %v741_v28 = vpack.c.bf16 %v725_v41, %v725_v41  ;;  %2116 = vrcp.f32 %v692_v12  ;;  %v713_v57 = vmul.f32 %v2111_v45, %v2737_v15  ;;  %v1080_v10 = vadd.f32 %v1079_v9, %v2847_v18 }
 0x2ed   :  { %v2836_v48 = vpop.eup %2112 }
 0x2ee   :  { %v669_v62 = vsel %vm551_vm3, %v2836_v48, 0.0  ;;  %v858_v25 = vunpack.c.l.b16 %v741_v28  ;;  %v729_v17 = vpack.c.bf16 %v713_v57, %v713_v57  ;;  %v1214_v38 = vpack.c.bf16 %v1080_v10, %v1080_v10 }
 0x2ef   :  { %670 = vadd.xlane.f32.xlu1 %v669_v62 }
 0x2f0   :  { %v863_v58 = vpack.c.b16 %v858_v25, %v857_v46  ;;  %v769_v27 = vunpack.c.l.b16 %v729_v17  ;;  %v1254_v14 = vunpack.c.l.b16 %v1214_v38 }
 0x2f1   :  { %v2115_v47 = vpop.eup %2114 }
 0x2f2   :  { %1982 = vmatmul.msk.bf16.gmra.mxu1 %vm551_vm3, %v863_v58  ;;  %v695_v11 = vpop.xlane.xlu1 %694  ;;  %v2117_v40 = vpop.eup %2116  ;;  %v712_v23 = vmul.f32 %v2115_v47, %v2747_v32 }
 0x2f3   :  { %2118 = vrcp.f32 %v695_v11  ;;  %v726_v13 = vmul.f32 %v2117_v40, %v2751_v39  ;;  %v1081_v15 = vpop.f32.mrf.mxu2 }
 0x2f4   :  { %v728_v44 = vpack.c.bf16 %v712_v23, %v712_v23  ;;  %v1082_v60 = vadd.f32 %v1081_v15, %v2847_v18 }
 0x2f5   :  { %v742_v63 = vpack.c.bf16 %v726_v13, %v726_v13 }
 0x2f6   :  { %v768_v16 = vunpack.c.l.b16 %v728_v44  ;;  %v1215_v19 = vpack.c.bf16 %v1082_v60, %v1082_v60 }
 0x2f7   :  { %v859_v34 = vunpack.c.l.b16 %v742_v63 }
 0x2f8   :  { %v776_v24 = vpack.c.b16 %v769_v27, %v768_v16  ;;  %v1255_v22 = vunpack.c.l.b16 %v1215_v19 }
 0x2f9   :  { %v2119_v61 = vpop.eup %2118 }
 0x2fa   :  { %v727_v36 = vmul.f32 %v2119_v61, %v2763_v52  ;;  %1976 = vmatmul.msk.bf16.vlgmr.msra.gmra.mxu0 %vm551_vm3, %v776_v24  ;;  %v1213_v52 = vpack.c.bf16 %v1077_v51, %v1077_v51  ;;  %v1261_v33 = vpack.c.b16 %v1255_v22, %v1254_v14  ;;  %v656_v47 = vpop.xlane.xlu2 %655  ;;  %v2863_v51 = vstv %s136_s27 }
 0x2fb   :  { %v1084_v39 = vpop.f32.mrf.mxu2  ;;  %2120 = vrcp.f32 %v656_v47 }
 0x2fc   :  { %v743_v56 = vpack.c.bf16 %v727_v36, %v727_v36  ;;  %v1253_v43 = vunpack.c.l.b16 %v1213_v52  ;;  %v1085_v4 = vadd.f32 %v1084_v39, %v2847_v18 }
 0x2fe   :  { %v860_v29 = vunpack.c.l.b16 %v743_v56  ;;  %v1260_v31 = vpack.c.b16 %v1253_v43, %v1252_v26  ;;  %v1216_v37 = vpack.c.bf16 %v1085_v4, %v1085_v4 }
 0x300   :  { %v864_v32 = vpack.c.b16 %v860_v29, %v859_v34  ;;  %v1256_v45 = vunpack.c.l.b16 %v1216_v37  ;;  %v2197_v37 = vld [vmem:[#allocation2 + $0x48] sm:$0xff] }
 0x301   :  { %v2121_v13 = vpop.eup %2120 }
 0x302   :  { %1983 = vmatmul.msk.bf16.gmra.mxu1 %vm551_vm3, %v864_v32  ;;  %v714_v61 = vmul.f32 %v2121_v13, %v2772_v7  ;;  %v2007_v13 = vld [vmem:[#allocation9 + $0x20] sm:$0xf] }
 0x303   :  { %v1086_v2 = vpop.f32.mrf.mxu2 }
 0x304   :  { %v1087_v12 = vadd.f32 %v1086_v2, %v2847_v18  ;;  %v730_v29 = vpack.c.bf16 %v714_v61, %v714_v61 }
 0x306   :  { %v1217_v41 = vpack.c.bf16 %v1087_v12, %v1087_v12  ;;  %v770_v49 = vunpack.c.l.b16 %v730_v29  ;;  %v1995_v29 = vld [vmem:[#allocation9 + $0x8] sm:$0xf] }
 0x308   :  { %v1257_v28 = vunpack.c.l.b16 %v1217_v41 }
 0x30a   :  { %v1262_v62 = vpack.c.b16 %v1257_v28, %v1256_v45 }
 0x30b   :  { %v1089_v5 = vpop.f32.mrf.mxu2 }
 0x30c   :  { %v1090_v46 = vadd.f32 %v1089_v5, %v2847_v18 }
 0x30e   :  { %v1218_v9 = vpack.c.bf16 %v1090_v46, %v1090_v46 }
 0x310   :  { %v1258_v11 = vunpack.c.l.b16 %v1218_v9 }
 0x312   :  { %1300 = vmatmul.bf16.vlgmr.msra.gmra.mxu1 %v1260_v31  ;;  %v2196_v31 = vld [vmem:[#allocation2 + $0x40] sm:$0xff] }
 0x313   :  { %v1091_v1 = vpop.f32.mrf.mxu2 }
 0x314   :  { %v1092_v25 = vadd.f32 %v1091_v1, %v2847_v18 }
 0x316   :  { %v1219_v58 = vpack.c.bf16 %v1092_v25, %v1092_v25 }
 0x318   :  { %v1259_v40 = vunpack.c.l.b16 %v1219_v58 }
 0x31a   :  { %v1263_v23 = vpack.c.b16 %v1259_v40, %v1258_v11 }
 0x31b   :  { %v1094_v54 = vpop.f32.mrf.mxu2 }
 0x31c   :  { %v1095_v27 = vadd.f32 %v1094_v54, %v2847_v18 }
 0x31e   :  { %v1220_v24 = vpack.c.bf16 %v1095_v27, %v1095_v27  ;;  %v2198_v27 = vld [vmem:[#allocation2 + $0x50] sm:$0xff] }
 0x320   :  { %v1329_v32 = vunpack.c.l.b16 %v1220_v24 }
 0x322   :  { %1305 = vmatmul.bf16.gmra.mxu1 %v1261_v33 }
 0x323   :  { %v1096_v57 = vpop.f32.mrf.mxu2 }
 0x324   :  { %v1097_v16 = vadd.f32 %v1096_v57, %v2847_v18 }
 0x326   :  { %v1221_v15 = vpack.c.bf16 %v1097_v16, %v1097_v16 }
 0x328   :  { %v1330_v39 = vunpack.c.l.b16 %v1221_v15 }
 0x32a   :  { %v1337_v43 = vpack.c.b16 %v1330_v39, %v1329_v32  ;;  %v2049_v32 = vld [vmem:[#allocation9 + $0x10] sm:$0xf0] }
 0x32b   :  { %v1099_v17 = vpop.f32.mrf.mxu2 }
 0x32c   :  { %v1100_v38 = vadd.f32 %v1099_v17, %v2847_v18 }
 0x32e   :  { %v1222_v33 = vpack.c.bf16 %v1100_v38, %v1100_v38 }
 0x332   :  { %1310 = vmatmul.bf16.gmra.mxu1 %v1262_v62  ;;  %v1331_v62 = vunpack.c.l.b16 %v1222_v33 }
 0x333   :  { %v1101_v63 = vpop.f32.mrf.mxu2 }
 0x334   :  { %v1102_v19 = vadd.f32 %v1101_v63, %v2847_v18 }
 0x336   :  { %v1223_v4 = vpack.c.bf16 %v1102_v19, %v1102_v19 }
 0x338   :  { %v1332_v46 = vunpack.c.l.b16 %v1223_v4 }
 0x33a   :  { %v1338_v40 = vpack.c.b16 %v1332_v46, %v1331_v62 }
 0x33b   :  { %v1104_v5 = vpop.f32.mrf.mxu2 }
 0x33c   :  { %v1105_v63 = vadd.f32 %v1104_v5, %v2847_v18 }
 0x342   :  { %v659_v44 = vpop.xlane.xlu0 %658  ;;  %1315 = vmatmul.bf16.gmra.mxu1 %v1263_v23 }
 0x343   :  { %2122 = vrcp.f32 %v659_v44  ;;  %v1106_v57 = vpop.f32.mrf.mxu2 }
 0x349   :  { %v2123_v36 = vpop.eup %2122 }
 0x34a   :  { %v662_v56 = vpop.xlane.xlu1 %661  ;;  %v715_v34 = vmul.f32 %v2123_v36, %v2804_v8 }
 0x34b   :  { %2124 = vrcp.f32 %v662_v56  ;;  %v1107_v56 = vadd.f32 %v1106_v57, %v2847_v18 }
 0x34c   :  { %v731_v3 = vpack.c.bf16 %v715_v34, %v715_v34  ;;  %v1109_v34 = vpop.f32.mrf.mxu2 }
 0x34e   :  { %v771_v52 = vunpack.c.l.b16 %v731_v3 }
 0x34f   :  { %v910_v26 = vpop.f32.mrf.mxu1 }
 0x350   :  { %v939_v7 = vmul.f32 %v2863_v51, %v910_v26  ;;  %v777_v2 = vpack.c.b16 %v771_v52, %v770_v49  ;;  %v1996_v49 = vor.u32 %v2049_v32, %v1995_v29  ;;  %v1224_v52 = vpack.c.bf16 %v1105_v63, %v1105_v63 }
 0x351   :  { %v2125_v8 = vpop.eup %2124 }
 0x352   :  { %v955_v10 = vadd.f32 %v2196_v31, %v939_v7  ;;  %v665_v60 = vpop.xlane.xlu2 %664  ;;  %1977 = vmatmul.msk.bf16.gmra.mxu0 %vm551_vm3, %v777_v2  ;;  %1377 = vmatmul.bf16.vlgmr.msrb.gmra.mxu1 %v1337_v43  ;;  %v716_v14 = vmul.f32 %v2125_v8, %v2812_v59  ;;  %v981_v59 = vld [vmem:[#allocation9 + $0x38] sm:$0xf]  ;;  %v1225_v43 = vpack.c.bf16 %v1107_v56, %v1107_v56  ;;  %v1333_v8 = vunpack.c.l.b16 %v1224_v52 }
 0x353   :  { %2126 = vrcp.f32 %v665_v60  ;;  %v1014_v47 = vunpack.c.l.b16 %v981_v59  ;;  %v2201_v59 = vld [vmem:[#allocation2 + $0x68] sm:$0xff] }
 0x354   :  { %1817 = vst.msk [vmem:[#allocation12 + $0x40] sm:$0xff] %vm193_vm0, %v955_v10  ;;  %v732_v28 = vpack.c.bf16 %v716_v14, %v716_v14  ;;  %v2199_v10 = vld [vmem:[#allocation2 + $0x58] sm:$0xff]  ;;  %v1334_v38 = vunpack.c.l.b16 %v1225_v43 }
 0x355   :  { %v1023_v44 = vpack.c.b16 %v1014_v47, %v1014_v47  ;;  %v2202_v47 = vld [vmem:[#allocation2] sm:$0xff] }
 0x356   :  { %v772_v9 = vunpack.c.l.b16 %v732_v28  ;;  %v1339_v33 = vpack.c.b16 %v1334_v38, %v1333_v8 }
 0x357   :  { %v912_v22 = vpop.f32.mrf.mxu1  ;;  %v1063_v24 = vsel %vm1055_vm1, %v1023_v44, 0 }
 0x358   :  { %v940_v1 = vmul.f32 %v2863_v51, %v912_v22  ;;  %1168 = vmatpush.bf16.msrb.mxu0 %v1063_v24  ;;  %v1111_v22 = vpop.f32.mrf.mxu2 }
 0x359   :  { %v2127_v12 = vpop.eup %2126 }
 0x35a   :  { %v956_v41 = vadd.f32 %v2197_v37, %v940_v1  ;;  %v668_v54 = vpop.xlane.xlu0 %667  ;;  %v717_v45 = vmul.f32 %v2127_v12, %v2821_v6  ;;  %v2052_v6 = vld [vmem:[#allocation9 + $0x28] sm:$0xf0]  ;;  %v2200_v12 = vld [vmem:[#allocation2 + $0x60] sm:$0xff] }
 0x35b   :  { %2128 = vrcp.f32 %v668_v54  ;;  %v2008_v36 = vor.u32 %v2052_v6, %v2007_v13  ;;  %v2203_v13 = vld [vmem:[#allocation2 + $0x70] sm:$0xff] }
 0x35c   :  { %1818 = vst.msk [vmem:[#allocation12 + $0x48] sm:$0xff] %vm193_vm0, %v956_v41  ;;  %v733_v25 = vpack.c.bf16 %v717_v45, %v717_v45  ;;  %v1112_v41 = vadd.f32 %v1111_v22, %v2847_v18 }
 0x35d   :  { %1169 = vmatpush.bf16.msrb.mxu0 %v2008_v36 }
 0x35e   :  { %v773_v58 = vunpack.c.l.b16 %v733_v25  ;;  %v1227_v45 = vpack.c.bf16 %v1112_v41, %v1112_v41 }
 0x35f   :  { %v915_v11 = vpop.f32.mrf.mxu1 }
 0x360   :  { %v941_v17 = vmul.f32 %v2863_v51, %v915_v11  ;;  %v778_v23 = vpack.c.b16 %v773_v58, %v772_v9  ;;  %v1336_v58 = vunpack.c.l.b16 %v1227_v45 }
 0x361   :  { %v2129_v15 = vpop.eup %2128  ;;  %1170 = vmatpush.bf16.msrb.mxu0 %v1996_v49 }
 0x362   :  { %v957_v16 = vadd.f32 %v2198_v27, %v941_v17  ;;  %1978 = vmatmul.msk.bf16.gmra.mxu0 %vm551_vm3, %v778_v23  ;;  %1382 = vmatmul.bf16.gmra.mxu1 %v1338_v40  ;;  %v671_v61 = vpop.xlane.xlu1 %670  ;;  %v718_v39 = vmul.f32 %v2129_v15, %v2827_v21  ;;  %v2204_v27 = vld [vmem:[#allocation2 + $0x8] sm:$0xff]  ;;  %v2205_v15 = vld [vmem:[#allocation2 + $0x78] sm:$0xff] }
 0x363   :  { %2130 = vrcp.f32 %v671_v61 }
 0x364   :  { %1819 = vst.msk [vmem:[#allocation12 + $0x50] sm:$0xff] %vm193_vm0, %v957_v16  ;;  %v734_v2 = vpack.c.bf16 %v718_v39, %v718_v39 }
 0x366   :  { %v774_v21 = vunpack.c.l.b16 %v734_v2  ;;  %v2206_v2 = vld [vmem:[#allocation2 + $0x10] sm:$0xff] }
 0x367   :  { %v917_v3 = vpop.f32.mrf.mxu1 }
 0x368   :  { %v942_v26 = vmul.f32 %v2863_v51, %v917_v3 }
 0x369   :  { %v2131_v7 = vpop.eup %2130 }
 0x36a   :  { %v719_v31 = vmul.f32 %v2131_v7, %v2836_v48  ;;  %v958_v60 = vadd.f32 %v2199_v10, %v942_v26  ;;  %v1110_v48 = vadd.f32 %v1109_v34, %v2847_v18 }
 0x36c   :  { %v735_v5 = vpack.c.bf16 %v719_v31, %v719_v31  ;;  %1820 = vst.msk [vmem:[#allocation12 + $0x58] sm:$0xff] %vm193_vm0, %v958_v60  ;;  %v1226_v54 = vpack.c.bf16 %v1110_v48, %v1110_v48 }
 0x36e   :  { %v775_v19 = vunpack.c.l.b16 %v735_v5  ;;  %v1335_v57 = vunpack.c.l.b16 %v1226_v54  ;;  %v2207_v5 = vld [vmem:[#allocation2 + $0x18] sm:$0xff]  ;;  %v2209_v54 = vld [vmem:[#allocation2 + $0x28] sm:$0xff] }
 0x36f   :  { %v920_v14 = vpop.f32.mrf.mxu1 }
 0x370   :  { %v943_v1 = vmul.f32 %v2863_v51, %v920_v14  ;;  %v779_v4 = vpack.c.b16 %v775_v19, %v774_v21  ;;  %v1340_v18 = vpack.c.b16 %v1336_v58, %v1335_v57  ;;  %v2210_v57 = vld [vmem:[#allocation2 + $0x30] sm:$0xff] }
 0x372   :  { %v959_v37 = vadd.f32 %v2200_v12, %v943_v1  ;;  %1979 = vmatmul.msk.bf16.gmra.mxu0 %vm551_vm3, %v779_v4  ;;  %1387 = vmatmul.bf16.gmra.mxu1 %v1339_v33  ;;  %v2208_v33 = vld [vmem:[#allocation2 + $0x20] sm:$0xff] }
 0x374   :  { %1821 = vst.msk [vmem:[#allocation12 + $0x60] sm:$0xff] %vm193_vm0, %v959_v37 }
 0x377   :  { %v922_v28 = vpop.f32.mrf.mxu1  ;;  %v825_v62 = vpop.f32.mrf.mxu0 }
 0x378   :  { %v944_v46 = vmul.f32 %v2863_v51, %v922_v28  ;;  %v931_v25 = vmul.f32 %v2863_v51, %v825_v62 }
 0x37a   :  { %v960_v9 = vadd.f32 %v2201_v59, %v944_v46  ;;  %v947_v11 = vadd.f32 %v2202_v47, %v931_v25 }
 0x37c   :  { %1822 = vst.msk [vmem:[#allocation12 + $0x68] sm:$0xff] %vm193_vm0, %v960_v9 }
 0x37d   :  { %1809 = vst.msk [vmem:[#allocation12] sm:$0xff] %vm193_vm0, %v947_v11 }
 0x37f   :  { %v925_v40 = vpop.f32.mrf.mxu1  ;;  %v827_v17 = vpop.f32.mrf.mxu0 }
 0x380   :  { %v945_v23 = vmul.f32 %v2863_v51, %v925_v40  ;;  %v932_v44 = vmul.f32 %v2863_v51, %v827_v17  ;;  %v2211_v40 = vld [vmem:[#allocation2 + $0x38] sm:$0xff] }
 0x382   :  { %v961_v6 = vadd.f32 %v2203_v13, %v945_v23  ;;  %2025 = vmatmul.msk.bf16.vlgmr.msrb.gmra.mxu0 %vm1030_vm2, %v2573_v42  ;;  %1392 = vmatmul.bf16.gmra.mxu1 %v1340_v18  ;;  %v948_v16 = vadd.f32 %v2204_v27, %v932_v44 }
 0x384   :  { %1823 = vst.msk [vmem:[#allocation12 + $0x70] sm:$0xff] %vm193_vm0, %v961_v6 }
 0x385   :  { %1810 = vst.msk [vmem:[#allocation12 + $0x8] sm:$0xff] %vm193_vm0, %v948_v16 }
 0x387   :  { %v927_v61 = vpop.f32.mrf.mxu1 }
 0x388   :  { %v946_v24 = vmul.f32 %v2863_v51, %v927_v61 }
 0x38a   :  { %v962_v36 = vadd.f32 %v2205_v15, %v946_v24 }
 0x38c   :  { %1824 = vst.msk [vmem:[#allocation12 + $0x78] sm:$0xff] %vm193_vm0, %v962_v36 }
 0x38f   :  { %v2901_v63 = vpop.f32.mrf.mxu1 }
 0x390   :  { %v1398_v56 = vsel %vm551_vm3, %v2901_v63, -inf }
 0x391   :  { %1399 = vmax.xlane.f32.xlu2 %v1398_v56 }
 0x392   :  { %2026 = vmatmul.msk.bf16.gmra.mxu0 %vm1030_vm2, %v2594_v0 }
 0x397   :  { %v2907_v42 = vpop.f32.mrf.mxu1 }
 0x398   :  { %v1401_v34 = vsel %vm551_vm3, %v2907_v42, -inf }
 0x399   :  { %1402 = vmax.xlane.f32.xlu0 %v1401_v34 }
 0x39f   :  { %v2911_v29 = vpop.f32.mrf.mxu1 }
 0x3a0   :  { %v1404_v32 = vsel %vm551_vm3, %v2911_v29, -inf }
 0x3a1   :  { %1405 = vmax.xlane.f32.xlu0 %v1404_v32 }
 0x3a2   :  { %2027 = vmatmul.msk.bf16.gmra.mxu0 %vm1030_vm2, %v2614_v35 }
 0x3a7   :  { %v2917_v39 = vpop.f32.mrf.mxu1 }
 0x3a8   :  { %v1407_v60 = vsel %vm551_vm3, %v2917_v39, -inf }
 0x3af   :  { %v2919_v3 = vpop.f32.mrf.mxu1 }
 0x3b0   :  { %v1410_v14 = vsel %vm551_vm3, %v2919_v3, -inf }
 0x3b2   :  { %2028 = vmatmul.msk.bf16.gmra.mxu0 %vm1030_vm2, %v2631_v20 }
 0x3b7   :  { %v2923_v0 = vpop.f32.mrf.mxu1 }
 0x3b8   :  { %v1413_v48 = vsel %vm551_vm3, %v2923_v0, -inf }
 0x3bf   :  { %v2925_v49 = vpop.f32.mrf.mxu1 }
 0x3c0   :  { %v1416_v46 = vsel %vm551_vm3, %v2925_v49, -inf }
 0x3c2   :  { %2029 = vmatmul.msk.bf16.gmra.mxu0 %vm1030_vm2, %v2644_v53 }
 0x3c7   :  { %v2929_v52 = vpop.f32.mrf.mxu1 }
 0x3c8   :  { %v1419_v11 = vsel %vm551_vm3, %v2929_v52, -inf }
 0x3cf   :  { %v830_v26 = vpop.f32.mrf.mxu0  ;;  %v2931_v43 = vpop.f32.mrf.mxu1 }
 0x3d0   :  { %v933_v35 = vmul.f32 %v2863_v51, %v830_v26  ;;  %v1422_v7 = vsel %vm551_vm3, %v2931_v43, -inf }
 0x3d1   :  { %1423 = vmax.xlane.f32.xlu1 %v1422_v7 }
 0x3d2   :  { %v949_v20 = vadd.f32 %v2206_v2, %v933_v35  ;;  %2030 = vmatmul.msk.bf16.gmra.mxu0 %vm1030_vm2, %v2664_v30 }
 0x3d4   :  { %1811 = vst.msk [vmem:[#allocation12 + $0x10] sm:$0xff] %vm193_vm0, %v949_v20 }
 0x3d7   :  { %v832_v31 = vpop.f32.mrf.mxu0  ;;  %v2939_v53 = vpop.f32.mrf.mxu1 }
 0x3d8   :  { %v934_v10 = vmul.f32 %v2863_v51, %v832_v31  ;;  %v1425_v8 = vsel %vm551_vm3, %v2939_v53, -inf }
 0x3d9   :  { %1408 = vmax.xlane.f32.xlu1 %v1407_v60  ;;  %1426 = vmax.xlane.f32.xlu2 %v1425_v8 }
 0x3da   :  { %v950_v38 = vadd.f32 %v2207_v5, %v934_v10 }
 0x3dc   :  { %1812 = vst.msk [vmem:[#allocation12 + $0x18] sm:$0xff] %vm193_vm0, %v950_v38 }
 0x3df   :  { %v835_v30 = vpop.f32.mrf.mxu0  ;;  %v2947_v21 = vpop.f32.mrf.mxu1 }
 0x3e0   :  { %v935_v19 = vmul.f32 %v2863_v51, %v835_v30  ;;  %v1428_v22 = vsel %vm551_vm3, %v2947_v21, -inf }
 0x3e1   :  { %1411 = vmax.xlane.f32.xlu1 %v1410_v14  ;;  %1429 = vmax.xlane.f32.xlu2 %v1428_v22 }
 0x3e2   :  { %v951_v1 = vadd.f32 %v2208_v33, %v935_v19  ;;  %2031 = vmatmul.msk.bf16.gmra.mxu0 %vm1030_vm2, %v2668_v50 }
 0x3e4   :  { %1813 = vst.msk [vmem:[#allocation12 + $0x20] sm:$0xff] %vm193_vm0, %v951_v1 }
 0x3e7   :  { %v837_v4 = vpop.f32.mrf.mxu0  ;;  %v2957_v12 = vpop.f32.mrf.mxu1 }
 0x3e8   :  { %v936_v37 = vmul.f32 %v2863_v51, %v837_v4  ;;  %v1431_v41 = vsel %vm551_vm3, %v2957_v12, -inf }
 0x3e9   :  { %1414 = vmax.xlane.f32.xlu2 %v1413_v48  ;;  %1432 = vmax.xlane.f32.xlu0 %v1431_v41 }
 0x3ea   :  { %v952_v45 = vadd.f32 %v2209_v54, %v936_v37 }
 0x3ec   :  { %1814 = vst.msk [vmem:[#allocation12 + $0x28] sm:$0xff] %vm193_vm0, %v952_v45 }
 0x3ef   :  { %v840_v50 = vpop.f32.mrf.mxu0  ;;  %v2965_v28 = vpop.f32.mrf.mxu1 }
 0x3f0   :  { %v937_v62 = vmul.f32 %v2863_v51, %v840_v50  ;;  %v1434_v25 = vsel %vm551_vm3, %v2965_v28, -inf }
 0x3f1   :  { %1417 = vmax.xlane.f32.xlu2 %v1416_v46  ;;  %1435 = vmax.xlane.f32.xlu0 %v1434_v25 }
 0x3f2   :  { %v953_v59 = vadd.f32 %v2210_v57, %v937_v62  ;;  %2032 = vmatmul.msk.bf16.gmra.mxu0 %vm1030_vm2, %v2672_v55 }
 0x3f4   :  { %1815 = vst.msk [vmem:[#allocation12 + $0x30] sm:$0xff] %vm193_vm0, %v953_v59 }
 0x3f7   :  { %v842_v9 = vpop.f32.mrf.mxu0  ;;  %v2975_v58 = vpop.f32.mrf.mxu1 }
 0x3f8   :  { %v938_v47 = vmul.f32 %v2863_v51, %v842_v9  ;;  %v1437_v18 = vsel %vm551_vm3, %v2975_v58, -inf }
 0x3f9   :  { %1420 = vmax.xlane.f32.xlu0 %v1419_v11  ;;  %1438 = vmax.xlane.f32.xlu1 %v1437_v18 }
 0x3fa   :  { %v954_v17 = vadd.f32 %v2211_v40, %v938_v47 }
 0x3fc   :  { %1816 = vst.msk [vmem:[#allocation12 + $0x38] sm:$0xff] %vm193_vm0, %v954_v17 }
 0x3ff   :  { %v1172_v55 = vpop.f32.mrf.mxu0  ;;  %v2983_v23 = vpop.f32.mrf.mxu1 }
 0x400   :  { %v1440_v44 = vsel %vm551_vm3, %v2983_v23, -inf }
 0x401   :  { %1441 = vmax.xlane.f32.xlu1 %v1440_v44 }
 0x404   :  { %v1400_v51 = vpop.xlane.xlu2 %1399 }
 0x405   :  { %v1446_v13 = vsub.f32 %v2901_v63, %v1400_v51 }
 0x407   :  { %v1462_v6 = vmul.f32 1.442695, %v1446_v13  ;;  %v1174_v27 = vpop.f32.mrf.mxu0  ;;  %v2988_v16 = vpop.f32.mrf.mxu1 }
 0x408   :  { %v1443_v61 = vsel %vm551_vm3, %v2988_v16, -inf }
 0x409   :  { %2132 = vpow2.f32 %v1462_v6  ;;  %1444 = vmax.xlane.f32.xlu2 %v1443_v61 }
 0x40c   :  { %v1403_v24 = vpop.xlane.xlu0 %1402 }
 0x40d   :  { %v1447_v15 = vsub.f32 %v2907_v42, %v1403_v24 }
 0x40f   :  { %v2993_v36 = vpop.eup %2132  ;;  %v1464_v56 = vmul.f32 1.442695, %v1447_v15  ;;  %v1177_v34 = vpop.f32.mrf.mxu0 }
 0x410   :  { %v1494_v32 = vsel %vm551_vm3, %v2993_v36, 0.0 }
 0x411   :  { %2134 = vpow2.f32 %v1464_v56  ;;  %1495 = vadd.xlane.f32.xlu0 %v1494_v32 }
 0x414   :  { %v1406_v63 = vpop.xlane.xlu0 %1405 }
 0x415   :  { %v1448_v26 = vsub.f32 %v2911_v29, %v1406_v63  ;;  %v2212_v29 = vld [vmem:[%s3186_s5] sm:$0x7]  ;;  %s1984_s5 = sld [smem:[#allocation11 + $0x1]] }
 0x416   :  { %v3009_v8 = vperm.slane %v2212_v29, 2 }
 0x417   :  { %v2998_v35 = vpop.eup %2134  ;;  %v1466_v7 = vmul.f32 1.442695, %v1448_v26  ;;  %v1179_v2 = vpop.f32.mrf.mxu0 }
 0x418   :  { %v1497_v20 = vsel %vm551_vm3, %v2998_v35, 0.0  ;;  %v1178_v22 = vadd.f32 %v1177_v34, %v3009_v8  ;;  %v1180_v1 = vadd.f32 %v1179_v2, %v3009_v8  ;;  %v1173_v45 = vadd.f32 %v1172_v55, %v3009_v8 }
 0x419   :  { %2136 = vpow2.f32 %v1466_v7  ;;  %1498 = vadd.xlane.f32.xlu1 %v1497_v20  ;;  %v1175_v50 = vadd.f32 %v1174_v27, %v3009_v8 }
 0x41a   :  { %v1592_v62 = vpack.c.bf16 %v1178_v22, %v1178_v22  ;;  %v1593_v46 = vpack.c.bf16 %v1180_v1, %v1180_v1  ;;  %v1590_v47 = vpack.c.bf16 %v1173_v45, %v1173_v45 }
 0x41b   :  { %v1591_v18 = vpack.c.bf16 %v1175_v50, %v1175_v50 }
 0x41c   :  { %v1636_v40 = vunpack.c.l.b16 %v1592_v62  ;;  %v1637_v17 = vunpack.c.l.b16 %v1593_v46  ;;  %v1634_v51 = vunpack.c.l.b16 %v1590_v47 }
 0x41d   :  { %v1635_v13 = vunpack.c.l.b16 %v1591_v18 }
 0x41e   :  { %v1643_v6 = vpack.c.b16 %v1637_v17, %v1636_v40 }
 0x41f   :  { %v3002_v42 = vpop.eup %2136  ;;  %v1182_v31 = vpop.f32.mrf.mxu0  ;;  %v1642_v15 = vpack.c.b16 %v1635_v13, %v1634_v51 }
 0x420   :  { %v1500_v10 = vsel %vm551_vm3, %v3002_v42, 0.0  ;;  %v1183_v30 = vadd.f32 %v1182_v31, %v3009_v8 }
 0x421   :  { %1501 = vadd.xlane.f32.xlu1 %v1500_v10 }
 0x422   :  { %v1594_v4 = vpack.c.bf16 %v1183_v30, %v1183_v30 }
 0x424   :  { %v1638_v25 = vunpack.c.l.b16 %v1594_v4 }
 0x427   :  { %v1184_v60 = vpop.f32.mrf.mxu0 }
 0x428   :  { %v1185_v19 = vadd.f32 %v1184_v60, %v3009_v8 }
 0x42a   :  { %v1595_v37 = vpack.c.bf16 %v1185_v19, %v1185_v19 }
 0x42c   :  { %v1639_v57 = vunpack.c.l.b16 %v1595_v37 }
 0x42e   :  { %v1644_v44 = vpack.c.b16 %v1639_v57, %v1638_v25 }
 0x42f   :  { %v1187_v5 = vpop.f32.mrf.mxu0 }
 0x430   :  { %v1188_v38 = vadd.f32 %v1187_v5, %v3009_v8 }
 0x432   :  { %v1596_v14 = vpack.c.bf16 %v1188_v38, %v1188_v38 }
 0x434   :  { %v1640_v41 = vunpack.c.l.b16 %v1596_v14 }
 0x437   :  { %v1189_v33 = vpop.f32.mrf.mxu0 }
 0x438   :  { %v1190_v48 = vadd.f32 %v1189_v33, %v3009_v8 }
 0x43a   :  { %v1597_v54 = vpack.c.bf16 %v1190_v48, %v1190_v48 }
 0x43c   :  { %v1641_v59 = vunpack.c.l.b16 %v1597_v54 }
 0x43e   :  { %v1645_v9 = vpack.c.b16 %v1641_v59, %v1640_v41 }
 0x43f   :  { %v3019_v11 = vpop.f32.mrf.mxu0 }
 0x440   :  { %1666 = vmatpush.bf16.msra.mxu2 %v1645_v9 }
 0x444   :  { %1667 = vmatpush.bf16.msra.mxu2 %v1644_v44  ;;  %v1424_v55 = vpop.xlane.xlu1 %1423 }
 0x445   :  { %v1454_v27 = vsub.f32 %v2931_v43, %v1424_v55 }
 0x447   :  { %v1478_v61 = vmul.f32 1.442695, %v1454_v27  ;;  %v3022_v24 = vpop.f32.mrf.mxu0 }
 0x448   :  { %1668 = vmatpush.bf16.msra.mxu2 %v1643_v6 }
 0x449   :  { %2138 = vpow2.f32 %v1478_v61 }
 0x44c   :  { %v1427_v56 = vpop.xlane.xlu2 %1426  ;;  %1669 = vmatpush.bf16.msra.mxu2 %v1642_v15  ;;  %v1409_v34 = vpop.xlane.xlu1 %1408 }
 0x44d   :  { %v1455_v32 = vsub.f32 %v2939_v53, %v1427_v56  ;;  %v1449_v63 = vsub.f32 %v2917_v39, %v1409_v34 }
 0x44f   :  { %v3026_v26 = vpop.eup %2138  ;;  %v1480_v7 = vmul.f32 1.442695, %v1455_v32  ;;  %v1468_v2 = vmul.f32 1.442695, %v1449_v63  ;;  %v3028_v20 = vpop.f32.mrf.mxu0 }
 0x450   :  { %v1518_v43 = vsel %vm551_vm3, %v3026_v26, 0.0 }
 0x451   :  { %2140 = vpow2.f32 %v1480_v7  ;;  %1519 = vadd.xlane.f32.xlu2 %v1518_v43  ;;  %v1198_v7 = vadd.f32 %v3028_v20, %v3009_v8  ;;  %v1193_v20 = vadd.f32 %v3019_v11, %v3009_v8 }
 0x452   :  { %2142 = vpow2.f32 %v1468_v2 }
 0x454   :  { %v1430_v31 = vpop.xlane.xlu2 %1429  ;;  %v1412_v10 = vpop.xlane.xlu1 %1411 }
 0x455   :  { %v1456_v60 = vsub.f32 %v2947_v21, %v1430_v31  ;;  %v1450_v53 = vsub.f32 %v2919_v3, %v1412_v10 }
 0x457   :  { %v3034_v29 = vpop.eup %2140  ;;  %v1482_v39 = vmul.f32 1.442695, %v1456_v60  ;;  %v1470_v5 = vmul.f32 1.442695, %v1450_v53  ;;  %v1199_v38 = vpop.f32.mrf.mxu0 }
 0x458   :  { %v3036_v30 = vpop.eup %2142  ;;  %v1521_v19 = vsel %vm551_vm3, %v3034_v29, 0.0  ;;  %v1200_v2 = vadd.f32 %v1199_v38, %v3009_v8  ;;  %v1195_v38 = vadd.f32 %v3022_v24, %v3009_v8 }
 0x459   :  { %2144 = vpow2.f32 %v1482_v39  ;;  %1522 = vadd.xlane.f32.xlu0 %v1521_v19  ;;  %v1503_v14 = vsel %vm551_vm3, %v3036_v30, 0.0 }
 0x45a   :  { %2146 = vpow2.f32 %v1470_v5  ;;  %1504 = vadd.xlane.f32.xlu2 %v1503_v14 }
 0x45c   :  { %v1415_v21 = vpop.xlane.xlu2 %1414  ;;  %v1433_v22 = vpop.xlane.xlu0 %1432 }
 0x45d   :  { %v1451_v3 = vsub.f32 %v2923_v0, %v1415_v21  ;;  %v1457_v33 = vsub.f32 %v2957_v12, %v1433_v22  ;;  %v1600_v21 = vpack.c.bf16 %v1198_v7, %v1198_v7  ;;  %v1601_v22 = vpack.c.bf16 %v1200_v2, %v1200_v2 }
 0x45f   :  { %v3044_v1 = vpop.eup %2144  ;;  %v1472_v4 = vmul.f32 1.442695, %v1451_v3  ;;  %v1484_v37 = vmul.f32 1.442695, %v1457_v33  ;;  %v1202_v48 = vpop.f32.mrf.mxu0 }
 0x460   :  { %v3046_v41 = vpop.eup %2146  ;;  %v1524_v54 = vsel %vm551_vm3, %v3044_v1, 0.0 }
 0x461   :  { %2148 = vpow2.f32 %v1472_v4  ;;  %1525 = vadd.xlane.f32.xlu0 %v1524_v54  ;;  %v1506_v45 = vsel %vm551_vm3, %v3046_v41, 0.0 }
 0x462   :  { %2150 = vpow2.f32 %v1484_v37  ;;  %1507 = vadd.xlane.f32.xlu2 %v1506_v45 }
 0x464   :  { %v1418_v0 = vpop.xlane.xlu2 %1417  ;;  %v1436_v50 = vpop.xlane.xlu0 %1435 }
 0x465   :  { %v1452_v12 = vsub.f32 %v2925_v49, %v1418_v0  ;;  %v1458_v62 = vsub.f32 %v2965_v28, %v1436_v50  ;;  %v1598_v0 = vpack.c.bf16 %v1193_v20, %v1193_v20  ;;  %v1599_v50 = vpack.c.bf16 %v1195_v38, %v1195_v38 }
 0x467   :  { %v3054_v46 = vpop.eup %2148  ;;  %v1474_v25 = vmul.f32 1.442695, %v1452_v12  ;;  %v1486_v57 = vmul.f32 1.442695, %v1458_v62  ;;  %v1204_v59 = vpop.f32.mrf.mxu0  ;;  %v1721_v62 = vunpack.c.l.b16 %v1600_v21  ;;  %v1719_v24 = vunpack.c.l.b16 %v1598_v0 }
 0x468   :  { %v3056_v9 = vpop.eup %2150  ;;  %v1509_v47 = vsel %vm551_vm3, %v3054_v46, 0.0  ;;  %v1205_v15 = vadd.f32 %v1204_v59, %v3009_v8 }
 0x469   :  { %2152 = vpow2.f32 %v1474_v25  ;;  %1510 = vadd.xlane.f32.xlu0 %v1509_v47  ;;  %v1527_v18 = vsel %vm551_vm3, %v3056_v9, 0.0  ;;  %v1722_v25 = vunpack.c.l.b16 %v1601_v22 }
 0x46a   :  { %2154 = vpow2.f32 %v1486_v57  ;;  %1528 = vadd.xlane.f32.xlu1 %v1527_v18  ;;  %v1603_v53 = vpack.c.bf16 %v1205_v15, %v1205_v15  ;;  %v1720_v57 = vunpack.c.l.b16 %v1599_v50 }
 0x46b   :  { %v1728_v59 = vpack.c.b16 %v1722_v25, %v1721_v62 }
 0x46c   :  { %v1421_v49 = vpop.xlane.xlu0 %1420  ;;  %v1439_v40 = vpop.xlane.xlu1 %1438  ;;  %v1724_v33 = vunpack.c.l.b16 %v1603_v53  ;;  %v1727_v18 = vpack.c.b16 %v1720_v57, %v1719_v24 }
 0x46d   :  { %v1453_v28 = vsub.f32 %v2929_v52, %v1421_v49  ;;  %v1459_v17 = vsub.f32 %v2975_v58, %v1439_v40  ;;  %v1203_v58 = vadd.f32 %v1202_v48, %v3009_v8 }
 0x46f   :  { %v3064_v44 = vpop.eup %2152  ;;  %v1476_v51 = vmul.f32 1.442695, %v1453_v28  ;;  %v1488_v13 = vmul.f32 1.442695, %v1459_v17  ;;  %v1207_v6 = vpop.f32.mrf.mxu0  ;;  %v1602_v60 = vpack.c.bf16 %v1203_v58, %v1203_v58 }
 0x470   :  { %v3066_v55 = vpop.eup %2154  ;;  %v1512_v27 = vsel %vm551_vm3, %v3064_v44, 0.0  ;;  %v1208_v52 = vadd.f32 %v1207_v6, %v3009_v8 }
 0x471   :  { %2156 = vpow2.f32 %v1476_v51  ;;  %1513 = vadd.xlane.f32.xlu0 %v1512_v27  ;;  %v1530_v61 = vsel %vm551_vm3, %v3066_v55, 0.0  ;;  %v1723_v3 = vunpack.c.l.b16 %v1602_v60 }
 0x472   :  { %2158 = vpow2.f32 %v1488_v13  ;;  %1531 = vadd.xlane.f32.xlu1 %v1530_v61  ;;  %v1604_v32 = vpack.c.bf16 %v1208_v52, %v1208_v52 }
 0x473   :  { %v1729_v11 = vpack.c.b16 %v1724_v33, %v1723_v3 }
 0x474   :  { %v1442_v56 = vpop.xlane.xlu1 %1441  ;;  %v1725_v19 = vunpack.c.l.b16 %v1604_v32 }
 0x475   :  { %v1460_v34 = vsub.f32 %v2983_v23, %v1442_v56 }
 0x477   :  { %v3076_v63 = vpop.eup %2156  ;;  %v1490_v43 = vmul.f32 1.442695, %v1460_v34  ;;  %v1209_v31 = vpop.f32.mrf.mxu0 }
 0x478   :  { %v3081_v10 = vpop.eup %2158  ;;  %v1210_v39 = vadd.f32 %v1209_v31, %v3009_v8  ;;  %v1515_v5 = vsel %vm551_vm3, %v3076_v63, 0.0 }
 0x479   :  { %2160 = vpow2.f32 %v1490_v43  ;;  %v1533_v23 = vsel %vm551_vm3, %v3081_v10, 0.0 }
 0x47a   :  { %v1605_v14 = vpack.c.bf16 %v1210_v39, %v1210_v39  ;;  %1516 = vadd.xlane.f32.xlu1 %v1515_v5  ;;  %1534 = vadd.xlane.f32.xlu2 %v1533_v23 }
 0x47c   :  { %v1726_v4 = vunpack.c.l.b16 %v1605_v14  ;;  %v1445_v37 = vpop.xlane.xlu2 %1444 }
 0x47d   :  { %v1461_v48 = vsub.f32 %v2988_v16, %v1445_v37 }
 0x47e   :  { %v1730_v54 = vpack.c.b16 %v1726_v4, %v1725_v19 }
 0x47f   :  { %v3093_v45 = vpop.eup %2160  ;;  %v1492_v12 = vmul.f32 1.442695, %v1461_v48 }
 0x480   :  { %1751 = vmatpush.bf16.msrb.mxu3 %v1730_v54  ;;  %v1536_v8 = vsel %vm551_vm3, %v3093_v45, 0.0 }
 0x481   :  { %2162 = vpow2.f32 %v1492_v12 }
 0x482   :  { %1537 = vadd.xlane.f32.xlu2 %v1536_v8 }
 0x484   :  { %v1496_v47 = vpop.xlane.xlu0 %1495  ;;  %1752 = vmatpush.bf16.msrb.mxu3 %v1729_v11 }
 0x485   :  { %2164 = vrcp.f32 %v1496_v47 }
 0x487   :  { %v3097_v16 = vpop.eup %2162 }
 0x488   :  { %1753 = vmatpush.bf16.msrb.mxu3 %v1728_v59  ;;  %v1539_v49 = vsel %vm551_vm3, %v3097_v16, 0.0 }
 0x489   :  { %1540 = vadd.xlane.f32.xlu0 %v1539_v49 }
 0x48b   :  { %v2165_v28 = vpop.eup %2164 }
 0x48c   :  { %1754 = vmatpush.bf16.msrb.mxu3 %v1727_v18  ;;  %v1499_v40 = vpop.xlane.xlu1 %1498  ;;  %v1558_v17 = vmul.f32 %v2165_v28, %v2993_v36 }
 0x48d   :  { %2166 = vrcp.f32 %v1499_v40 }
 0x48e   :  { %v1574_v13 = vpack.c.bf16 %v1558_v17, %v1558_v17 }
 0x490   :  { %v1614_v61 = vunpack.c.l.b16 %v1574_v13 }
 0x493   :  { %v2167_v51 = vpop.eup %2166 }
 0x494   :  { %v1559_v6 = vmul.f32 %v2167_v51, %v2998_v35  ;;  %v1502_v56 = vpop.xlane.xlu1 %1501 }
 0x496   :  { %v1575_v27 = vpack.c.bf16 %v1559_v6, %v1559_v6 }
 0x498   :  { %v1615_v52 = vunpack.c.l.b16 %v1575_v27 }
 0x49a   :  { %v1622_v58 = vpack.c.b16 %v1615_v52, %v1614_v61 }
 0x49c   :  { %2033 = vmatmul.msk.bf16.vlgmr.msra.gmra.mxu2 %vm551_vm3, %v1622_v58 }
 0x4c4   :  { %v1520_v15 = vpop.xlane.xlu2 %1519 }
 0x4c5   :  { %2168 = vrcp.f32 %v1520_v15 }
 0x4c6   :  { %2170 = vrcp.f32 %v1502_v56 }
 0x4cb   :  { %v2169_v32 = vpop.eup %2168 }
 0x4cc   :  { %v1523_v34 = vpop.xlane.xlu0 %1522  ;;  %v2171_v2 = vpop.eup %2170  ;;  %v1566_v36 = vmul.f32 %v2169_v32, %v3026_v26 }
 0x4cd   :  { %2172 = vrcp.f32 %v1523_v34  ;;  %v1505_v7 = vpop.xlane.xlu2 %1504  ;;  %v1560_v35 = vmul.f32 %v2171_v2, %v3002_v42 }
 0x4ce   :  { %2174 = vrcp.f32 %v1505_v7  ;;  %v1582_v60 = vpack.c.bf16 %v1566_v36, %v1566_v36 }
 0x4cf   :  { %v1576_v5 = vpack.c.bf16 %v1560_v35, %v1560_v35 }
 0x4d0   :  { %v1699_v38 = vunpack.c.l.b16 %v1582_v60 }
 0x4d1   :  { %v1616_v22 = vunpack.c.l.b16 %v1576_v5 }
 0x4d3   :  { %v2173_v43 = vpop.eup %2172 }
 0x4d4   :  { %v2175_v31 = vpop.eup %2174  ;;  %v1567_v53 = vmul.f32 %v2173_v43, %v3034_v29  ;;  %v1526_v39 = vpop.xlane.xlu0 %1525 }
 0x4d5   :  { %v1561_v23 = vmul.f32 %v2175_v31, %v3036_v30  ;;  %v1508_v19 = vpop.xlane.xlu2 %1507 }
 0x4d6   :  { %v1583_v14 = vpack.c.bf16 %v1567_v53, %v1567_v53  ;;  %2176 = vrcp.f32 %v1508_v19  ;;  %v3125_v19 = vstv %s1984_s5 }
 0x4d7   :  { %v1577_v20 = vpack.c.bf16 %v1561_v23, %v1561_v23  ;;  %2178 = vrcp.f32 %v1526_v39 }
 0x4d8   :  { %v1700_v21 = vunpack.c.l.b16 %v1583_v14 }
 0x4d9   :  { %v1617_v26 = vunpack.c.l.b16 %v1577_v20 }
 0x4da   :  { %v1707_v3 = vpack.c.b16 %v1700_v21, %v1699_v38  ;;  %v2213_v38 = vld [vmem:[#allocation6] sm:$0xff] }
 0x4db   :  { %v1623_v42 = vpack.c.b16 %v1617_v26, %v1616_v22  ;;  %v2214_v22 = vld [vmem:[#allocation6 + $0x8] sm:$0xff] }
 0x4dc   :  { %v1511_v33 = vpop.xlane.xlu0 %1510  ;;  %2037 = vmatmul.msk.bf16.vlgmr.msrb.gmra.mxu3 %vm551_vm3, %v1707_v3  ;;  %v2177_v4 = vpop.eup %2176 }
 0x4dd   :  { %2180 = vrcp.f32 %v1511_v33  ;;  %2034 = vmatmul.msk.bf16.gmra.mxu2 %vm551_vm3, %v1623_v42  ;;  %v1529_v29 = vpop.xlane.xlu1 %1528  ;;  %v2179_v30 = vpop.eup %2178  ;;  %v1562_v37 = vmul.f32 %v2177_v4, %v3046_v41  ;;  %v2215_v4 = vld [vmem:[#allocation6 + $0x10] sm:$0xff] }
 0x4de   :  { %2182 = vrcp.f32 %v1529_v29  ;;  %v1568_v48 = vmul.f32 %v2179_v30, %v3044_v1 }
 0x4df   :  { %v1578_v50 = vpack.c.bf16 %v1562_v37, %v1562_v37 }
 0x4e0   :  { %v1584_v62 = vpack.c.bf16 %v1568_v48, %v1568_v48 }
 0x4e1   :  { %v1618_v59 = vunpack.c.l.b16 %v1578_v50 }
 0x4e2   :  { %v1701_v18 = vunpack.c.l.b16 %v1584_v62 }
 0x4e3   :  { %v2181_v54 = vpop.eup %2180 }
 0x4e4   :  { %v2183_v0 = vpop.eup %2182  ;;  %v1563_v12 = vmul.f32 %v2181_v54, %v3054_v46  ;;  %v1514_v24 = vpop.xlane.xlu0 %1513  ;;  %v2216_v54 = vld [vmem:[#allocation6 + $0x18] sm:$0xff] }
 0x4e5   :  { %v1569_v25 = vmul.f32 %v2183_v0, %v3056_v9  ;;  %v1532_v11 = vpop.xlane.xlu1 %1531 }
 0x4e6   :  { %v1579_v8 = vpack.c.bf16 %v1563_v12, %v1563_v12  ;;  %2184 = vrcp.f32 %v1532_v11 }
 0x4e7   :  { %v1585_v57 = vpack.c.bf16 %v1569_v25, %v1569_v25  ;;  %2186 = vrcp.f32 %v1514_v24  ;;  %v2217_v25 = vld [vmem:[#allocation6 + $0x20] sm:$0xff] }
 0x4e8   :  { %v1619_v47 = vunpack.c.l.b16 %v1579_v8 }
 0x4e9   :  { %v1702_v49 = vunpack.c.l.b16 %v1585_v57 }
 0x4ea   :  { %v1624_v41 = vpack.c.b16 %v1619_v47, %v1618_v59  ;;  %v2218_v59 = vld [vmem:[#allocation6 + $0x28] sm:$0xff] }
 0x4eb   :  { %v1708_v1 = vpack.c.b16 %v1702_v49, %v1701_v18 }
 0x4ec   :  { %v2185_v28 = vpop.eup %2184 }
 0x4ed   :  { %v1535_v40 = vpop.xlane.xlu2 %1534  ;;  %2035 = vmatmul.msk.bf16.gmra.mxu2 %vm551_vm3, %v1624_v41  ;;  %2038 = vmatmul.msk.bf16.gmra.mxu3 %vm551_vm3, %v1708_v1  ;;  %v1517_v46 = vpop.xlane.xlu1 %1516  ;;  %v1570_v17 = vmul.f32 %v2185_v28, %v3066_v55  ;;  %v2220_v28 = vld [vmem:[#allocation6 + $0x30] sm:$0xff] }
 0x4ee   :  { %2188 = vrcp.f32 %v1535_v40  ;;  %v2187_v9 = vpop.eup %2186  ;;  %v2219_v40 = vld [vmem:[#allocation6 + $0x40] sm:$0xff] }
 0x4ef   :  { %2190 = vrcp.f32 %v1517_v46  ;;  %v1564_v51 = vmul.f32 %v2187_v9, %v3064_v44  ;;  %v1586_v27 = vpack.c.bf16 %v1570_v17, %v1570_v17 }
 0x4f1   :  { %v1580_v58 = vpack.c.bf16 %v1564_v51, %v1564_v51  ;;  %v1703_v32 = vunpack.c.l.b16 %v1586_v27 }
 0x4f3   :  { %v1620_v2 = vunpack.c.l.b16 %v1580_v58 }
 0x4f4   :  { %v2189_v13 = vpop.eup %2188 }
 0x4f5   :  { %v2191_v6 = vpop.eup %2190  ;;  %v1571_v61 = vmul.f32 %v2189_v13, %v3081_v10  ;;  %v1538_v52 = vpop.xlane.xlu2 %1537 }
 0x4f6   :  { %v1565_v15 = vmul.f32 %v2191_v6, %v3076_v63  ;;  %2192 = vrcp.f32 %v1538_v52  ;;  %v2221_v52 = vld [vmem:[#allocation6 + $0x58] sm:$0xff] }
 0x4f7   :  { %v1587_v56 = vpack.c.bf16 %v1571_v61, %v1571_v61 }
 0x4f8   :  { %v1581_v34 = vpack.c.bf16 %v1565_v15, %v1565_v15  ;;  %v2222_v15 = vld [vmem:[#allocation6 + $0x48] sm:$0xff] }
 0x4f9   :  { %v1704_v7 = vunpack.c.l.b16 %v1587_v56 }
 0x4fa   :  { %v1621_v36 = vunpack.c.l.b16 %v1581_v34  ;;  %v2223_v34 = vld [vmem:[#allocation6 + $0x38] sm:$0xff] }
 0x4fb   :  { %v1709_v35 = vpack.c.b16 %v1704_v7, %v1703_v32 }
 0x4fc   :  { %v1541_v55 = vpop.xlane.xlu0 %1540  ;;  %v1625_v43 = vpack.c.b16 %v1621_v36, %v1620_v2  ;;  %v2193_v44 = vpop.eup %2192 }
 0x4fd   :  { %2194 = vrcp.f32 %v1541_v55  ;;  %2039 = vmatmul.msk.bf16.gmra.mxu3 %vm551_vm3, %v1709_v35  ;;  %v1572_v10 = vmul.f32 %v2193_v44, %v3093_v45  ;;  %v2224_v55 = vld [vmem:[#allocation6 + $0x70] sm:$0xff] }
 0x4fe   :  { %2036 = vmatmul.msk.bf16.gmra.mxu2 %vm551_vm3, %v1625_v43  ;;  %v2225_v44 = vld [vmem:[#allocation6 + $0x50] sm:$0xff] }
 0x4ff   :  { %v1588_v63 = vpack.c.bf16 %v1572_v10, %v1572_v10 }
 0x501   :  { %v1705_v39 = vunpack.c.l.b16 %v1588_v63 }
 0x503   :  { %v2195_v31 = vpop.eup %2194 }
 0x504   :  { %v1573_v60 = vmul.f32 %v2195_v31, %v3097_v16  ;;  %v2226_v31 = vld [vmem:[#allocation6 + $0x60] sm:$0xff] }
 0x506   :  { %v1589_v53 = vpack.c.bf16 %v1573_v60, %v1573_v60 }
 0x508   :  { %v1706_v5 = vunpack.c.l.b16 %v1589_v53 }
 0x50a   :  { %v1710_v23 = vpack.c.b16 %v1706_v5, %v1705_v39 }
 0x50d   :  { %2040 = vmatmul.msk.bf16.gmra.mxu3 %vm551_vm3, %v1710_v23  ;;  %v2227_v23 = vld [vmem:[#allocation6 + $0x78] sm:$0xff] }
 0x51f   :  { %v1671_v14 = vpop.f32.mrf.mxu2 }
 0x520   :  { %v1777_v20 = vmul.f32 %v3125_v19, %v1671_v14 }
 0x522   :  { %v1793_v21 = vadd.f32 %v2213_v38, %v1777_v20  ;;  %v2228_v20 = vld [vmem:[#allocation6 + $0x68] sm:$0xff] }
 0x524   :  { %1841 = vrot.lane.b32.xlu1 %v1793_v21, %s2380_s30 }
 0x527   :  { %v1673_v45 = vpop.f32.mrf.mxu2 }
 0x528   :  { %v1778_v16 = vmul.f32 %v3125_v19, %v1673_v45 }
 0x52a   :  { %v1794_v26 = vadd.f32 %v2214_v22, %v1778_v16 }
 0x52c   :  { %1843 = vrot.lane.b32.xlu2 %v1794_v26, %s2380_s30 }
 0x55f   :  { %v1756_v3 = vpop.f32.mrf.mxu3 }
 0x560   :  { %v1676_v42 = vpop.f32.mrf.mxu2  ;;  %v1785_v18 = vmul.f32 %v3125_v19, %v1756_v3 }
 0x561   :  { %v1779_v33 = vmul.f32 %v3125_v19, %v1676_v42 }
 0x562   :  { %v1801_v46 = vadd.f32 %v2219_v40, %v1785_v18 }
 0x563   :  { %v1795_v29 = vadd.f32 %v2215_v4, %v1779_v33 }
 0x565   :  { %1845 = vrot.lane.b32.xlu0 %v1795_v29, %s2380_s30 }
 0x567   :  { %v1758_v30 = vpop.f32.mrf.mxu3 }
 0x568   :  { %v1678_v37 = vpop.f32.mrf.mxu2  ;;  %v1786_v13 = vmul.f32 %v3125_v19, %v1758_v30 }
 0x569   :  { %v1780_v48 = vmul.f32 %v3125_v19, %v1678_v37 }
 0x56a   :  { %v1802_v56 = vadd.f32 %v2222_v15, %v1786_v13 }
 0x56b   :  { %v1796_v0 = vadd.f32 %v2216_v54, %v1780_v48 }
 0x56d   :  { %1847 = vrot.lane.b32.xlu2 %v1796_v0, %s2380_s30 }
 0x570   :  { %v1681_v50 = vpop.f32.mrf.mxu2  ;;  %v1761_v12 = vpop.f32.mrf.mxu3 }
 0x571   :  { %v1781_v62 = vmul.f32 %v3125_v19, %v1681_v50  ;;  %v1787_v7 = vmul.f32 %v3125_v19, %v1761_v12 }
 0x573   :  { %v1797_v11 = vadd.f32 %v2217_v25, %v1781_v62  ;;  %v1803_v10 = vadd.f32 %v2225_v44, %v1787_v7 }
 0x575   :  { %1849 = vrot.lane.b32.xlu1 %v1797_v11, %s2380_s30 }
 0x578   :  { %v1683_v8 = vpop.f32.mrf.mxu2  ;;  %v1763_v24 = vpop.f32.mrf.mxu3 }
 0x579   :  { %v1782_v57 = vmul.f32 %v3125_v19, %v1683_v8  ;;  %v1788_v51 = vmul.f32 %v3125_v19, %v1763_v24 }
 0x57b   :  { %v1798_v47 = vadd.f32 %v2218_v59, %v1782_v57  ;;  %v1804_v58 = vadd.f32 %v2221_v52, %v1788_v51 }
 0x57d   :  { %1851 = vrot.lane.b32.xlu0 %v1798_v47, %s2380_s30 }
 0x580   :  { %v1766_v49 = vpop.f32.mrf.mxu3 }
 0x581   :  { %v1686_v41 = vpop.f32.mrf.mxu2  ;;  %v1789_v2 = vmul.f32 %v3125_v19, %v1766_v49 }
 0x582   :  { %v1783_v1 = vmul.f32 %v3125_v19, %v1686_v41 }
 0x583   :  { %v1805_v63 = vadd.f32 %v2226_v31, %v1789_v2 }
 0x584   :  { %v1799_v9 = vadd.f32 %v2220_v28, %v1783_v1 }
 0x585   :  { %1857 = vrot.lane.b32.xlu0 %v1801_v46, %s2380_s30 }
 0x586   :  { %1853 = vrot.lane.b32.xlu2 %v1799_v9, %s2380_s30  ;;  %v1844_v17 = vpop.permute.xlu2 %1843 }
 0x587   :  { %1891 = vst.msk [vmem:[#allocation12 + $0x8] sm:$0xff] %vm1889_vm4, %v1844_v17 }
 0x588   :  { %v1768_v6 = vpop.f32.mrf.mxu3 }
 0x589   :  { %v1688_v27 = vpop.f32.mrf.mxu2  ;;  %v1790_v53 = vmul.f32 %v3125_v19, %v1768_v6 }
 0x58a   :  { %v1784_v61 = vmul.f32 %v3125_v19, %v1688_v27 }
 0x58b   :  { %v1806_v38 = vadd.f32 %v2228_v20, %v1790_v53 }
 0x58c   :  { %v1800_v32 = vadd.f32 %v2223_v34, %v1784_v61 }
 0x58d   :  { %1863 = vrot.lane.b32.xlu0 %v1804_v58, %s2380_s30 }
 0x58e   :  { %1859 = vrot.lane.b32.xlu2 %v1802_v56, %s2380_s30  ;;  %1855 = vrot.lane.b32.xlu1 %v1800_v32, %s2380_s30 }
 0x590   :  { %v1771_v36 = vpop.f32.mrf.mxu3 }
 0x591   :  { %v1791_v35 = vmul.f32 %v3125_v19, %v1771_v36 }
 0x593   :  { %v1807_v43 = vadd.f32 %v2224_v55, %v1791_v35 }
 0x595   :  { %1869 = vrot.lane.b32.xlu0 %v1807_v43, %s2380_s30 }
 0x596   :  { %1865 = vrot.lane.b32.xlu2 %v1805_v63, %s2380_s30  ;;  %1861 = vrot.lane.b32.xlu1 %v1803_v10, %s2380_s30  ;;  %v1842_v60 = vpop.permute.xlu1 %1841 }
 0x597   :  { %1890 = vst.msk [vmem:[#allocation12] sm:$0xff] %vm1889_vm4, %v1842_v60 }
 0x598   :  { %v1773_v39 = vpop.f32.mrf.mxu3 }
 0x599   :  { %v1792_v5 = vmul.f32 %v3125_v19, %v1773_v39 }
 0x59b   :  { %v1808_v14 = vadd.f32 %v2227_v23, %v1792_v5 }
 0x59e   :  { %1871 = vrot.lane.b32.xlu2 %v1808_v14, %s2380_s30  ;;  %1867 = vrot.lane.b32.xlu1 %v1806_v38, %s2380_s30 }
 0x5c7   :  { %v1848_v21 = vpop.permute.xlu2 %1847 }
 0x5c8   :  { %1893 = vst.msk [vmem:[#allocation12 + $0x18] sm:$0xff] %vm1889_vm4, %v1848_v21 }
 0x5d7   :  { %v1846_v45 = vpop.permute.xlu0 %1845 }
 0x5d8   :  { %1892 = vst.msk [vmem:[#allocation12 + $0x10] sm:$0xff] %vm1889_vm4, %v1846_v45 }
 0x5e0   :  { %v1854_v16 = vpop.permute.xlu2 %1853 }
 0x5e1   :  { %1896 = vst.msk [vmem:[#allocation12 + $0x30] sm:$0xff] %vm1889_vm4, %v1854_v16 }
 0x5e7   :  { %v1850_v22 = vpop.permute.xlu1 %1849 }
 0x5e8   :  { %v1860_v26 = vpop.permute.xlu2 %1859  ;;  %1894 = vst.msk [vmem:[#allocation12 + $0x20] sm:$0xff] %vm1889_vm4, %v1850_v22 }
 0x5e9   :  { %1899 = vst.msk [vmem:[#allocation12 + $0x48] sm:$0xff] %vm1889_vm4, %v1860_v26 }
 0x5ef   :  { %v1852_v19 = vpop.permute.xlu0 %1851 }
 0x5f0   :  { %1895 = vst.msk [vmem:[#allocation12 + $0x28] sm:$0xff] %vm1889_vm4, %v1852_v19  ;;  %v1866_v3 = vpop.permute.xlu2 %1865 }
 0x5f1   :  { %1902 = vst.msk [vmem:[#allocation12 + $0x60] sm:$0xff] %vm1889_vm4, %v1866_v3 }
 0x5f7   :  { %v1858_v42 = vpop.permute.xlu0 %1857 }
 0x5f8   :  { %1898 = vst.msk [vmem:[#allocation12 + $0x40] sm:$0xff] %vm1889_vm4, %v1858_v42  ;;  %v1872_v33 = vpop.permute.xlu2 %1871 }
 0x5f9   :  { %1905 = vst.msk [vmem:[#allocation12 + $0x78] sm:$0xff] %vm1889_vm4, %v1872_v33 }
 0x5ff   :  { %v1864_v4 = vpop.permute.xlu0 %1863 }
 0x600   :  { %1901 = vst.msk [vmem:[#allocation12 + $0x58] sm:$0xff] %vm1889_vm4, %v1864_v4  ;;  %v1856_v29 = vpop.permute.xlu1 %1855 }
 0x601   :  { %1897 = vst.msk [vmem:[#allocation12 + $0x38] sm:$0xff] %vm1889_vm4, %v1856_v29 }
 0x607   :  { %v1870_v30 = vpop.permute.xlu0 %1869 }
 0x608   :  { %1904 = vst.msk [vmem:[#allocation12 + $0x70] sm:$0xff] %vm1889_vm4, %v1870_v30  ;;  %v1862_v37 = vpop.permute.xlu1 %1861 }
 0x609   :  { %1900 = vst.msk [vmem:[#allocation12 + $0x50] sm:$0xff] %vm1889_vm4, %v1862_v37 }
 0x610   :  { %v1868_v48 = vpop.permute.xlu1 %1867 }
 0x611   :  { %1903 = vst.msk [vmem:[#allocation12 + $0x68] sm:$0xff] %vm1889_vm4, %v1868_v48 }
 0x612   :  { %1918 = dma.vmem_to_hbm [thread:$0]  %s1911_s11, 2048, %s1913_s14, [#allocation4], %s2372_s9, %s2372_s9, %s2373_s10  }
 0x613   :  { %2369 = dma.done.wait [#allocation4], 2048  }
 0x614   :  { %2370 = vsyncadd [#allocation4], 4294965248 }
 0x615   :  { %1923 = vsyncpa [#allocation3], 1 }
 0x616   :  { %1924 = vsyncpa [#allocation7], 1 }
 0x617   :  { %1925 = vsyncpa [#allocation10], 1 }
 0x618   :  { %1926 = vsyncpa [#allocation4], 1 }
 0x619   :  { %1927 = vsyncpa [#allocation5], 1 }

</bundles_post_ra>
